<compile_context>
chip_gen: v7x
topology: tpu7x:2x2x1
jax: 0.10.0
libtpu: 0.0.40
codegen_flags: <defaults>
</compile_context>

<pallas_src>
import jax
import jax.numpy as jnp
from jax import lax
from jax.experimental import pallas as pl
from jax.experimental.pallas import tpu as pltpu


def _round_up(x, m):
    return ((x + m - 1) // m) * m


# ---------------------------------------------------------------------------
# Pallas kernel: fused (patch_tile @ W) + bias + ReLU  (one M tile per step)
# ---------------------------------------------------------------------------
def _conv_mm_relu_kernel(p_ref, w_ref, b_ref, o_ref):
    # p_ref: (TILE_M, K) bf16   w_ref: (K, C_out_pad) bf16   b_ref: (1, C_out_pad) f32
    acc = jnp.dot(p_ref[...], w_ref[...], preferred_element_type=jnp.float32)
    acc = acc + b_ref[...]
    o_ref[...] = jnp.maximum(acc, 0.0).astype(o_ref.dtype)


def _conv_mm_relu(patches, w_mat, bias_row, out_dtype, tile_m):
    M_pad, K = patches.shape
    _, C_out_pad = w_mat.shape
    assert M_pad % tile_m == 0
    grid_m = M_pad // tile_m

    out_itemsize = jnp.dtype(out_dtype).itemsize
    # Double-buffered working set: patch tile + weight + bias + output tile.
    vmem_bytes = 2 * (
        tile_m * K * patches.dtype.itemsize
        + K * C_out_pad * w_mat.dtype.itemsize
        + C_out_pad * bias_row.dtype.itemsize
        + tile_m * C_out_pad * out_itemsize
    )
    # Headroom, but cap below v7x's 64 MiB physical VMEM.
    vmem_limit = int(min(max(vmem_bytes + (4 << 20), 8 << 20), 48 << 20))

    cost = pl.CostEstimate(
        flops=2 * M_pad * K * C_out_pad,
        transcendentals=0,
        bytes_accessed=(
            patches.size * patches.dtype.itemsize
            + w_mat.size * w_mat.dtype.itemsize
            + bias_row.size * bias_row.dtype.itemsize
            + M_pad * C_out_pad * out_itemsize
        ),
    )

    return pl.pallas_call(
        _conv_mm_relu_kernel,
        out_shape=jax.ShapeDtypeStruct((M_pad, C_out_pad), out_dtype),
        grid=(grid_m,),
        in_specs=[
            pl.BlockSpec((tile_m, K), lambda i: (i, 0)),        # streamed M tiles
            pl.BlockSpec((K, C_out_pad), lambda i: (0, 0)),     # resident weight
            pl.BlockSpec((1, C_out_pad), lambda i: (0, 0)),     # resident bias
        ],
        out_specs=pl.BlockSpec((tile_m, C_out_pad), lambda i: (i, 0)),
        compiler_params=pltpu.CompilerParams(
            dimension_semantics=("parallel",),   # shard M tiles across TCs (v7x)
            vmem_limit_bytes=vmem_limit,
        ),
        cost_estimate=cost,
    )(patches, w_mat, bias_row)


# ---------------------------------------------------------------------------
# Module: LastLevelP6
# ---------------------------------------------------------------------------
class LastLevelP6:
    def __init__(self, in_channels, out_channels, key):
        self.in_channels = in_channels
        self.out_channels = out_channels
        self.use_P5 = in_channels == out_channels
        # nn.Conv2d(in, out, 3, 2, 1) weights: (C_out, C_in, 3, 3)
        # kaiming_uniform_(a=1): bound = sqrt(6 / ((1 + a^2) * fan_in)) = sqrt(3 / fan_in)
        fan_in = in_channels * 3 * 3
        bound = (3.0 / fan_in) ** 0.5
        self.weight = jax.random.uniform(
            key, (out_channels, in_channels, 3, 3),
            minval=-bound, maxval=bound, dtype=jnp.float32)
        self.bias = jnp.zeros((out_channels,), dtype=jnp.float32)

    def _im2col_bf16(self, x_nchw, c_in_pad):
        # x: (N, C_in, H, W) -> patches (N*H_out*W_out, 9*c_in_pad) in bf16.
        # Reduction axis ordered (kh, kw, c_in) to match the weight reshape.
        N, C, H, W = x_nchw.shape
        H_out = (H + 2 * 1 - 3) // 2 + 1
        W_out = (W + 2 * 1 - 3) // 2 + 1
        x = jnp.transpose(x_nchw, (0, 2, 3, 1)).astype(jnp.bfloat16)
        x = jnp.pad(x, ((0, 0), (1, 1), (1, 1), (0, c_in_pad - C)))
        taps = []
        for kh in range(3):
            for kw in range(3):
                taps.append(x[:, kh:kh + 2 * H_out:2, kw:kw + 2 * W_out:2, :])
        patches = jnp.stack(taps, axis=3)                 # (N, Ho, Wo, 9, Cp)
        patches = patches.reshape(N * H_out * W_out, 9 * c_in_pad)
        return patches, (N, H_out, W_out)

    def __call__(self, c5, p5):
        x = p5 if self.use_P5 else c5
        C_in, C_out = self.in_channels, self.out_channels

        # Lane-dense padded channel counts (multiples of 128).
        c_in_pad = _round_up(C_in, 128)
        c_out_pad = _round_up(C_out, 128)

        patches, (N, H_out, W_out) = self._im2col_bf16(x, c_in_pad)
        M = patches.shape[0]

        # Tile M; pad to a whole number of tiles (zeros -> sliced away below).
        tile_m = 512 if M >= 512 else _round_up(M, 16)
        M_pad = _round_up(M, tile_m)
        if M_pad != M:
            patches = jnp.pad(patches, ((0, M_pad - M), (0, 0)))

        # weight (C_out, C_in, 3, 3) -> (3, 3, C_in, C_out), pad channels,
        # reshape to (9*c_in_pad, c_out_pad); ordering matches patches.
        w = jnp.transpose(self.weight, (2, 3, 1, 0))
        w = jnp.pad(w, ((0, 0), (0, 0), (0, c_in_pad - C_in), (0, c_out_pad - C_out)))
        w_mat = w.reshape(9 * c_in_pad, c_out_pad).astype(jnp.bfloat16)
        bias_row = jnp.pad(self.bias, (0, c_out_pad - C_out)).reshape(
            1, c_out_pad).astype(jnp.float32)

        out_flat = _conv_mm_relu(patches, w_mat, bias_row, x.dtype, tile_m)

        # (M_pad, c_out_pad) -> (N, H_out, W_out, C_out) -> NCHW
        out = out_flat[:M, :C_out].reshape(N, H_out, W_out, C_out)
        p6 = jnp.transpose(out, (0, 3, 1, 2))
        return [p6]


# ---------------------------------------------------------------------------
# Main
# ---------------------------------------------------------------------------
if __name__ == "__main__":
    key = jax.random.PRNGKey(0)
    k_w, k_b, k_c5, k_p5 = jax.random.split(key, 4)

    # Small demo shapes; odd spatial size exercises the padded partial M tile.
    N, C_in, C_out, H, W = 2, 4, 8, 62, 62   # use_P5 = False -> uses c5
    module = LastLevelP6(C_in, C_out, k_w)
    # Spec init is zero bias; give it a non-zero value here to exercise the
    # bias + ReLU path in the test harness.
    module.bias = 0.1 * jax.random.normal(k_b, (C_out,), dtype=jnp.float32)

    c5 = jax.random.normal(k_c5, (N, C_in, H, W), dtype=jnp.float32)
    p5 = jax.random.normal(k_p5, (N, C_out, H, W), dtype=jnp.float32)

    (p6,) = module(c5, p5)
    p6 = jax.block_until_ready(p6)

    H_out = (H + 2 - 3) // 2 + 1
    W_out = (W + 2 - 3) // 2 + 1
    assert p6.shape == (N, C_out, H_out, W_out), p6.shape

    # Reference: same bf16 operand quantization, f32 conv + bias + ReLU.
    x_q = c5.astype(jnp.bfloat16).astype(jnp.float32)
    w_q = module.weight.astype(jnp.bfloat16).astype(jnp.float32)
    ref = lax.conv_general_dilated(
        x_q, w_q, window_strides=(2, 2), padding=((1, 1), (1, 1)),
        dimension_numbers=("NCHW", "OIHW", "NCHW"),
        precision=lax.Precision.HIGHEST)
    ref = jnp.maximum(ref + module.bias.reshape(1, C_out, 1, 1), 0.0).astype(c5.dtype)

    assert jnp.allclose(p6, ref, atol=1e-3, rtol=1e-3), float(jnp.max(jnp.abs(p6 - ref)))

    print("KERNEL_OK")
</pallas_src>

<mosaic_0001>
module attributes {stable_mosaic.version = 11 : i64} {
  func.func @_conv_mm_relu_kernel(%arg0: i32, %arg1: memref<512x1152xbf16, #tpu.memory_space<vmem>>, %arg2: memref<1152x128xbf16, #tpu.memory_space<vmem>>, %arg3: memref<1x128xf32, #tpu.memory_space<vmem>>, %arg4: memref<512x128xf32, #tpu.memory_space<vmem>>) attributes {dimension_semantics = [#tpu.dimension_semantics<parallel>], iteration_bounds = array<i64: 4>, scalar_prefetch = 0 : i64, scratch_operands = 0 : i64, tpu.core_type = #tpu.core_type<tc>, window_params = [{transform_indices = @transform_0, window_bounds = array<i64: 512, 1152>}, {pipeline_mode = #tpu.pipeline_mode<synchronous>, transform_indices = @transform_1, window_bounds = array<i64: 1152, 128>}, {pipeline_mode = #tpu.pipeline_mode<synchronous>, transform_indices = @transform_2, window_bounds = array<i64: 1, 128>}, {transform_indices = @transform_3, window_bounds = array<i64: 512, 128>}]} {
    %c0 = arith.constant 0 : index
    %c0_0 = arith.constant 0 : index
    %0 = vector.load %arg1[%c0, %c0_0] : memref<512x1152xbf16, #tpu.memory_space<vmem>>, vector<512x1152xbf16>
    %c0_1 = arith.constant 0 : index
    %c0_2 = arith.constant 0 : index
    %1 = vector.load %arg2[%c0_1, %c0_2] : memref<1152x128xbf16, #tpu.memory_space<vmem>>, vector<1152x128xbf16>
    %cst = arith.constant dense<0.000000e+00> : vector<512x128xf32>
    %2 = tpu.matmul %0, %1, %cst {dimension_numbers = #tpu.dot_dimension_numbers<[1], [0], [0], [1], [0, 0, 1, 1], [], []>} : vector<512x1152xbf16>, vector<1152x128xbf16>, vector<512x128xf32> -> vector<512x128xf32>
    %c0_3 = arith.constant 0 : index
    %c0_4 = arith.constant 0 : index
    %3 = vector.load %arg3[%c0_3, %c0_4] : memref<1x128xf32, #tpu.memory_space<vmem>>, vector<1x128xf32>
    %4 = vector.broadcast %3 : vector<1x128xf32> to vector<512x128xf32>
    %5 = arith.addf %2, %4 : vector<512x128xf32>
    %cst_5 = arith.constant 0.000000e+00 : f32
    %6 = vector.broadcast %cst_5 : f32 to vector<512x128xf32>
    %7 = arith.maximumf %5, %6 : vector<512x128xf32>
    %c0_6 = arith.constant 0 : index
    %c0_7 = arith.constant 0 : index
    %8 = vector.load %arg4[%c0_6, %c0_7] : memref<512x128xf32, #tpu.memory_space<vmem>>, vector<512x128xf32>
    tpu.vector_store %arg4[%c0_6, %c0_7], %7 {strides = array<i32>} : memref<512x128xf32, #tpu.memory_space<vmem>>, vector<512x128xf32>,
    return
  }
  func.func @transform_0(%arg0: i32) -> (i32, i32) {
    %c0_i32 = arith.constant 0 : i32
    %c0_i32_0 = arith.constant 0 : i32
    return %arg0, %c0_i32 : i32, i32
  }
  func.func @transform_1(%arg0: i32) -> (i32, i32) {
    %c0_i32 = arith.constant 0 : i32
    %c0_i32_0 = arith.constant 0 : i32
    %c0_i32_1 = arith.constant 0 : i32
    return %c0_i32, %c0_i32_0 : i32, i32
  }
  func.func @transform_2(%arg0: i32) -> (i32, i32) {
    %c0_i32 = arith.constant 0 : i32
    %c0_i32_0 = arith.constant 0 : i32
    %c0_i32_1 = arith.constant 0 : i32
    return %c0_i32, %c0_i32_0 : i32, i32
  }
  func.func @transform_3(%arg0: i32) -> (i32, i32) {
    %c0_i32 = arith.constant 0 : i32
    %c0_i32_0 = arith.constant 0 : i32
    return %arg0, %c0_i32 : i32, i32
  }
}

</mosaic_0001>

<bundles_post_ra>
// kernel: tpu_custom_call.1
= control target key start
LH: loop header
LB: loop body
LE: loop exit
PB: predicated region body
PF: predicated region fallthrough
CT: control target
= control target key end

     0   :  { %8 = vsyncpa [#allocation3], 0  ;;  %s7098_s0 = inlined_call_operand.hbm [shape: bf16[2048,1152], index: 0, kind: input, shape index: {}]   ;;  %s7099_s1 = inlined_call_operand.hbm [shape: bf16[1152,128], index: 1, kind: input, shape index: {}]   ;;  %s7100_s2 = inlined_call_operand.hbm [shape: f32[1,128], index: 2, kind: input, shape index: {}]   ;;  %s7101_s3 = inlined_call_operand.hbm [shape: f32[2048,128], index: 3, kind: output, shape index: {}]  }
   0x1   :  { %10 = vsyncpa [#allocation3 + $0x1], 0 }
   0x2   :  { %11 = vsyncpa [#allocation6], 0 }
   0x3   :  { %12 = vsyncpa [#allocation4], 0 }
   0x4   :  { %14 = vsyncpa [#allocation4 + $0x1], 0  ;;  %s5944_s12 = smov 0   ;;  %s5946_s13 = smov 0  }
   0x5   :  { %s5948_s14 = smov 0   ;;  %s5950_s15 = smov 0  }
   0x6 LB: > { %s5965_s16 = sadd.s32 4294967295, %s5911_s15   ;;  %s4274_s17 = sadd.s32 4294967294, %s5911_s15   ;;  %s5911_s15 = sphi %s5950_s15, %s7154_s15   ;;  %s5907_s14 = sphi %s5948_s14, %s7153_s14   ;;  %s5903_s13 = sphi %s5946_s13, %s7152_s13   ;;  %s5899_s12 = sphi %s5944_s12, %s7151_s12  }
   0x7   : > { %p40_p0 = scmp.ne.s32.totalorder %s5903_s13, %s5899_s12  ;;  %p7102_p1 = scmp.eq.s32.totalorder %s5965_s16, 0 }
   0x8   : > { %p112_p3 = scmp.eq.s32.totalorder %s4274_s17, 3  ;;  %p4275_p5 = scmp.ge.s32.totalorder %s5911_s15, 1 }
   0x9   : > { %p5974_p4 = por %p7102_p1, %p40_p0  ;;  %p119_p7 = scmp.lt.s32.totalorder %s5911_s15, 5 }
   0xa   : > { %p5979_p6 = por %p112_p3, %p40_p0  ;;  %s5913_s21 = smov [#allocation5]  }
   0xb   : > { %s7105_s18 = scalar_select %p5974_p4, 1, 0 }
   0xc   : > { %s7106_s19 = scalar_select %p5979_p6, 1, 0 }
   0xd   : > { %p5984_p8 = pnand %p4275_p5, %p119_p7  ;;  %s131_s22 = sshll.u32 %s5913_s21, 4  ;;  %s132_s22 = int_to_ptr.vmem [resolvable:$true] %s131_s22 }
   0xe   : > { %s5914_s24 = smov [#allocation7]   ;;  %s5755_s28 = scalar_lea.hbm %s7099_s1, 9216 }
   0xf   : > { %s7107_s20 = scalar_select %p5984_p8, 1, 0 }
  0x10   : > { %p5204_p9 = pneg %p5984_p8  ;;  %s145_s25 = sshll.u32 %s5914_s24, 4  ;;  %s5996_s25 = int_to_ptr.vmem [resolvable:$true] %s145_s25 }
  0x11   : > { %p5756_p11 = scmp.ne.s32.totalorder %s7099_s1, %s5755_s28  ;;  %p5762_p3 = scmp.lt.u32.totalorder %s5755_s28, %s7099_s1 }
  0x12   : > { %p5992_p10 = pnand %p5204_p9, %p7102_p1 }
  0x14   : > { %p5757_p12 = pneg %p5992_p10 }
  0x16   : > { %p5758_p13 = pnand %p5757_p12, %p5756_p11 }
  0x18   : > { %p5759_p0 = pneg %p5758_p13 }
  0x1a   : > { %p5764_p5 = pnand %p5762_p3, %p5759_p0 }
  0x1c   : > { %5767 = shalt.err (!%p5764_p5)
}
  0x1d   : > { %s5768_s6 = scalar_lea.vmem %s132_s22, 9216  ;;  %p5776_p2 = scmp.lt.s32.totalorder %s132_s22, %s132_s22 }
  0x1e   : > { %p5769_p7 = scmp.ne.s32.totalorder %s132_s22, %s5768_s6  ;;  %p5777_p6 = scmp.lt.s32.totalorder %s5768_s6, %s5768_s6 }
  0x20   : > { %p5771_p9 = pnand %p5769_p7, %p5757_p12  ;;  %p5778_p4 = por %p5777_p6, %p5776_p2 }
  0x22   : > { %p5772_p1 = pneg %p5771_p9 }
  0x24   : > { %p5779_p8 = pnand %p5778_p4, %p5772_p1 }
  0x26   : > { %5782 = shalt.err (!%p5779_p8)
}
  0x27   : > { %s5915_s7 = smov 64   ;;  %s5916_s8 = smov 4  }
  0x28   : > { %5207 = dma.hbm_to_vmem [thread:$0]  (!%p5992_p10), %s7099_s1, 9216, %s132_s22, [#allocation6], %s5915_s7, %s5915_s7, %s5916_s8  }
  0x29   : > { %s5783_s21 = scalar_lea.hbm %s7100_s2, 16 }
  0x2a   : > { %p5784_p11 = scmp.ne.s32.totalorder %s7100_s2, %s5783_s21  ;;  %p5790_p4 = scmp.lt.u32.totalorder %s5783_s21, %s7100_s2 }
  0x2c   : > { %p5786_p1 = pnand %p5784_p11, %p5757_p12 }
  0x2e   : > { %p5787_p2 = pneg %p5786_p1 }
  0x30   : > { %p5792_p6 = pnand %p5790_p4, %p5787_p2 }
  0x32   : > { %5795 = shalt.err (!%p5792_p6)
}
  0x33   : > { %s5796_s22 = scalar_lea.vmem %s5996_s25, 16  ;;  %s5803_s29 = scalar_lea.vmem %s5996_s25, 32 }
  0x34   : > { %p5797_p8 = scmp.ne.s32.totalorder %s5996_s25, %s5796_s22  ;;  %p5804_p3 = scmp.lt.s32.totalorder %s5996_s25, %s5996_s25 }
  0x35   : > { %p5805_p5 = scmp.lt.s32.totalorder %s5803_s29, %s5796_s22 }
  0x36   : > { %p5799_p13 = pnand %p5797_p8, %p5757_p12 }
  0x37   : > { %p5806_p7 = por %p5805_p5, %p5804_p3 }
  0x38   : > { %p5800_p0 = pneg %p5799_p13 }
  0x3a   : > { %p5807_p9 = pnand %p5806_p7, %p5800_p0 }
  0x3c   : > { %5810 = shalt.err (!%p5807_p9)
}
  0x3d   : > { %5210 = dma.hbm_to_vmem [thread:$0]  (!%p5992_p10), %s7100_s2, 16, %s5996_s25, [#allocation6]  }
  0x3e   : > { %s6047_s5 = sadd.s32 1, %s5911_s15   ;;  %s27_s23 = sadd.s32 1, %s5907_s14 }
  0x3f   : > { %s24_s6 = ssub.s32 %s5911_s15, %s6047_s5  ;;  %p34_p12 = scmp.ne.s32.totalorder %s5907_s14, %s5903_s13 }
  0x40   : > { %p25_p11 = scmp.eq.s32.totalorder %s24_s6, 0  ;;  %p35_p1 = scmp.eq.s32.totalorder %s5911_s15, 0 }
  0x41   : > { %p7109_p2 = scmp.eq.s32.totalorder %s5965_s16, 3  ;;  %p5221_p6 = scmp.lt.s32.totalorder %s5911_s15, 4 }
  0x42   : > { %s6063_s8 = scalar_select %p25_p11, %s5907_s14, %s27_s23  }
  0x43   : > { %p6057_p4 = por %p7109_p2, %p34_p12  ;;  %p36_p8 = por %p35_p1, %p34_p12 }
  0x44   : > { %s156_s9 = sand.u32 1, %s5907_s14   ;;  %s5190_s25 = smul.u32 36864, %s5911_s15 }
  0x45   : > { %s5189_s10 = smul.u32 2304, %s156_s9  ;;  %p6067_p10 = pnand %p5221_p6, %p36_p8 }
  0x46   : > { %s6074_s24 = scalar_lea.hbm %s7098_s0, %s5190_s25  ;;  %s6078_s28 = scalar_lea.sflag [#allocation3], %s156_s9 }
  0x47   : > { %s160_s26 = scalar_lea.vmem [#allocation2], %s5189_s10  ;;  %s5811_s22 = scalar_lea.hbm %s6074_s24, 36864 }
  0x48   : > { %s168_s27 = sshll.u32 %s160_s26, 4  ;;  %p5812_p13 = scmp.ne.s32.totalorder %s6074_s24, %s5811_s22  ;;  %s6076_s27 = int_to_ptr.vmem [resolvable:$true] %s168_s27 }
  0x49   : > { %p5813_p0 = pneg %p6067_p10  ;;  %s5816_s4 = scalar_lea.hbm %s7098_s0, 147456 }
  0x4a   : > { %p5817_p7 = scmp.lt.u32.totalorder %s6074_s24, %s7098_s0  ;;  %p5818_p9 = scmp.lt.u32.totalorder %s5816_s4, %s5811_s22 }
  0x4b   : > { %p5814_p3 = pnand %p5813_p0, %p5812_p13  ;;  %p5820_p11 = scmp.lt.u32.totalorder %s5811_s22, %s6074_s24 }
  0x4c   : > { %p5819_p12 = por %p5818_p9, %p5817_p7 }
  0x4d   : > { %p5815_p5 = pneg %p5814_p3 }
  0x4e   : > { %p5821_p1 = por %p5820_p11, %p5819_p12 }
  0x50   : > { %p5822_p2 = pnand %p5821_p1, %p5815_p5 }
  0x52   : > { %5825 = shalt.err (!%p5822_p2)
}
  0x53   : > { %s5826_s9 = scalar_lea.vmem %s6076_s27, 36864  ;;  %s5917_s10 = smov [#allocation2]  }
  0x54   : > { %p5827_p6 = scmp.ne.s32.totalorder %s6076_s27, %s5826_s9  ;;  %s5831_s25 = sshll.u32 %s5917_s10, 4  ;;  %s5832_s25 = int_to_ptr.vmem [resolvable:$false] %s5831_s25 }
  0x55   : > { %s5833_s17 = scalar_lea.vmem %s5832_s25, 73728  ;;  %p5834_p3 = scmp.lt.s32.totalorder %s6076_s27, %s5832_s25 }
  0x56   : > { %p5829_p8 = pnand %p5827_p6, %p5813_p0  ;;  %p5835_p7 = scmp.lt.s32.totalorder %s5833_s17, %s5826_s9 }
  0x58   : > { %p5830_p13 = pneg %p5829_p8  ;;  %p5836_p9 = por %p5835_p7, %p5834_p3 }
  0x5a   : > { %p5837_p12 = pnand %p5836_p9, %p5830_p13 }
  0x5c   : > { %5840 = shalt.err (!%p5837_p12)
}
  0x5d   : > { %s5918_s21 = smov 576   ;;  %s5919_s26 = smov 36  }
  0x5e   : > { %5214 = dma.hbm_to_vmem [thread:$0]  (!%p6067_p10), %s6074_s24, 36864, %s6076_s27, %s6078_s28, %s5918_s21, %s5918_s21, %s5919_s26  }
  0x5f   : > { %p7112_p0 = scmp.ne.s32.totalorder %s7107_s20, 0 }
  0x61   : > { %180 = sbr.rel (%p7112_p0) target bundleno = 981 (0x3d5), region = 32 }
  0x68   : > { %s6109_s22 = sand.u32 1, %s5903_s13   ;;  %p7113_p5 = scmp.ne.s32.totalorder %s7105_s18, 0 }
  0x69   : > { %s5191_s29 = smul.u32 2304, %s6109_s22  ;;  %s183_s30 = scalar_lea.sflag [#allocation3], %s6109_s22 }
  0x6b   : > { %s6113_s4 = scalar_lea.vmem [#allocation2], %s5191_s29 }
  0x6c   : > { %5886 = dma.done.wait (%p7113_p5), %s183_s30, 36864  }
  0x6d   : > { %5888 = vsyncadd (%p7113_p5), %s183_s30, 4294930432  ;;  %p7114_p10 = scmp.eq.s32.totalorder %s5965_s16, 0 }
  0x6f   : > { %5890 = dma.done.wait (%p7114_p10), [#allocation6], 9232   ;;  %p7115_p11 = pmov %p7114_p10 }
  0x70   : > { %v5920_v0 = vmov 0   ;;  %v5266_v1 = vld [vmem:[#allocation5] sm:$0xff]   ;;  %v5268_v3 = vld [vmem:[#allocation5 + $0x8] sm:$0xff]   ;;  %v5270_v5 = vld [vmem:[#allocation5 + $0x10] sm:$0xff]   ;;  %s4285_s18 = sshll.u32 %s6109_s22, 9  ;;  %s4652_s11 = sshll.u32 %s5965_s16, 13 }
  0x71   : > { %5892 = vsyncadd (%p7115_p11), [#allocation6], 4294958064  ;;  %2595 = vmatprep.subr.bf16.mxu1 %v5920_v0  ;;  %2884 = vmatprep.subr.bf16.mxu0 %v5920_v0  ;;  %v6125_v2 = vld [vmem:[#allocation5 + $0x80] sm:$0xff]   ;;  %v6129_v4 = vld [vmem:[#allocation5 + $0x88] sm:$0xff]   ;;  %s6830_s20 = scalar_lea.vmem [#allocation8], %s4285_s18  ;;  %s7050_s23 = scalar_lea.hbm %s7101_s3, %s4652_s11 }
  0x72   : > { %2596 = vmatpush1.bf16.msra.mxu1 %v5266_v1  ;;  %2885 = vmatpush1.bf16.msra.mxu0 %v6125_v2  ;;  %v6134_v6 = vld [vmem:[#allocation5 + $0x90] sm:$0xff]   ;;  %v5272_v7 = vld [vmem:[#allocation5 + $0x18] sm:$0xff]   ;;  %v5274_v9 = vld [vmem:[#allocation5 + $0x20] sm:$0xff]   ;;  %s4182_s24 = sshll.u32 %s6830_s20, 4  ;;  %s4169_s16 = scalar_lea.sflag [#allocation4], %s6109_s22  ;;  %s7052_s24 = int_to_ptr.vmem [resolvable:$true] %s4182_s24 }
  0x73   : > { %2597 = vmatprep.subr.bf16.mxu1 %v5920_v0  ;;  %2886 = vmatprep.subr.bf16.mxu0 %v5920_v0  ;;  %v6139_v8 = vld [vmem:[#allocation5 + $0x98] sm:$0xff]   ;;  %v6144_v10 = vld [vmem:[#allocation5 + $0xa0] sm:$0xff]   ;;  %v5276_v11 = vld [vmem:[#allocation5 + $0x28] sm:$0xff]   ;;  %s5841_s6 = scalar_lea.vmem %s7052_s24, 8192  ;;  %s5921_s9 = smov [#allocation8]  }
  0x74   : > { %v6149_v12 = vld [vmem:[#allocation5 + $0xa8] sm:$0xff]   ;;  %v5278_v13 = vld [vmem:[#allocation5 + $0x30] sm:$0xff]   ;;  %v5280_v15 = vld [vmem:[#allocation5 + $0x38] sm:$0xff]   ;;  %p5842_p1 = scmp.ne.s32.totalorder %s7052_s24, %s5841_s6  ;;  %s5845_s10 = sshll.u32 %s5921_s9, 4  ;;  %s5846_s10 = int_to_ptr.vmem [resolvable:$false] %s5845_s10 }
  0x75   : > { %v6154_v14 = vld [vmem:[#allocation5 + $0xb0] sm:$0xff]   ;;  %v6159_v16 = vld [vmem:[#allocation5 + $0xb8] sm:$0xff]   ;;  %v5282_v17 = vld [vmem:[#allocation5 + $0x40] sm:$0xff]   ;;  %s5847_s25 = scalar_lea.vmem %s5846_s10, 16384  ;;  %p5848_p8 = scmp.lt.s32.totalorder %s7052_s24, %s5846_s10 }
  0x76   : > { %2598 = vmatpush1.bf16.msra.mxu1 %v5268_v3  ;;  %2887 = vmatpush1.bf16.msra.mxu0 %v6129_v4  ;;  %v6164_v18 = vld [vmem:[#allocation5 + $0xc0] sm:$0xff]   ;;  %v5284_v20 = vld [vmem:[#allocation5 + $0x48] sm:$0xff]   ;;  %v5286_v23 = vld [vmem:[#allocation5 + $0x50] sm:$0xff]   ;;  %p5843_p2 = pnand %p5842_p1, %p6057_p4  ;;  %p5849_p13 = scmp.lt.s32.totalorder %s5847_s25, %s5841_s6 }
  0x77   : > { %2599 = vmatprep.subr.bf16.mxu1 %v5920_v0  ;;  %2888 = vmatprep.subr.bf16.mxu0 %v5920_v0  ;;  %v5300_v19 = vld [vmem:[%s6113_s4 + $0x4] ss:$36 sps:$4 sm:$0xff]   ;;  %v5303_v21 = vld [vmem:[%s6113_s4 + $0xc] ss:$36 sps:$4 sm:$0xff]   ;;  %v5288_v25 = vld [vmem:[#allocation5 + $0x58] sm:$0xff]  }
  0x78   : > { %v6171_v22 = vld [vmem:[#allocation5 + $0xc8] sm:$0xff]   ;;  %2627 = vmatprep.mubr.bf16.mxu1 %v5300_v19  ;;  %2916 = vmatprep.mubr.bf16.mxu0 %v5303_v21  ;;  %v6176_v24 = vld [vmem:[#allocation5 + $0xd0] sm:$0xff]   ;;  %v6181_v26 = vld [vmem:[#allocation5 + $0xd8] sm:$0xff]   ;;  %p5844_p6 = pneg %p5843_p2  ;;  %p5850_p3 = por %p5849_p13, %p5848_p8 }
  0x79   : > { %v5290_v27 = vld [vmem:[#allocation5 + $0x60] sm:$0xff]   ;;  %v5292_v29 = vld [vmem:[#allocation5 + $0x68] sm:$0xff]   ;;  %v5294_v31 = vld [vmem:[#allocation5 + $0x70] sm:$0xff]  }
  0x7a   : > { %2600 = vmatpush1.bf16.msra.mxu1 %v5270_v5  ;;  %2889 = vmatpush1.bf16.msra.mxu0 %v6134_v6  ;;  %v6186_v28 = vld [vmem:[#allocation5 + $0xe0] sm:$0xff]   ;;  %v6191_v30 = vld [vmem:[#allocation5 + $0xe8] sm:$0xff]   ;;  %v6196_v32 = vld [vmem:[#allocation5 + $0xf0] sm:$0xff]   ;;  %p5851_p7 = pnand %p5850_p3, %p5844_p6 }
  0x7b   : > { %2601 = vmatprep.subr.bf16.mxu1 %v5920_v0  ;;  %2890 = vmatprep.subr.bf16.mxu0 %v5920_v0  ;;  %v5296_v33 = vld [vmem:[#allocation5 + $0x78] sm:$0xff]   ;;  %v5298_v35 = vld [vmem:[%s6113_s4] ss:$36 sps:$4 sm:$0xff]   ;;  %v5301_v36 = vld [vmem:[%s6113_s4 + $0x8] ss:$36 sps:$4 sm:$0xff]  }
  0x7c   : > { %v6201_v34 = vld [vmem:[#allocation5 + $0xf8] sm:$0xff]   ;;  %v5304_v37 = vld [vmem:[#allocation5 + $0x100] sm:$0xff]   ;;  %v5306_v38 = vld [vmem:[%s6113_s4 + $0x4c] ss:$36 sps:$4 sm:$0xff]  }
  0x7d   : > { %v5308_v39 = vld [vmem:[%s6113_s4 + $0x54] ss:$36 sps:$4 sm:$0xff]   ;;  %v5305_v40 = vld [vmem:[#allocation5 + $0x108] sm:$0xff]   ;;  %v5316_v45 = vld [vmem:[%s6113_s4 + $0x9c] ss:$36 sps:$4 sm:$0xff]  }
  0x7e   : > { %2602 = vmatpush1.bf16.msra.mxu1 %v5272_v7  ;;  %2891 = vmatpush1.bf16.msra.mxu0 %v6139_v8  ;;  %v5310_v41 = vld [vmem:[%s6113_s4 + $0x48] ss:$36 sps:$4 sm:$0xff]   ;;  %v5311_v42 = vld [vmem:[%s6113_s4 + $0x50] ss:$36 sps:$4 sm:$0xff]   ;;  %v5313_v46 = vld [vmem:[#allocation5 + $0x118] sm:$0xff]  }
  0x7f   : > { %2603 = vmatprep.subr.bf16.mxu1 %v5920_v0  ;;  %2892 = vmatprep.subr.bf16.mxu0 %v5920_v0  ;;  %v5314_v43 = vld [vmem:[%s6113_s4 + $0x94] ss:$36 sps:$4 sm:$0xff]   ;;  %v5320_v49 = vld [vmem:[#allocation5 + $0x120] sm:$0xff]   ;;  %v5321_v52 = vld [vmem:[#allocation5 + $0x128] sm:$0xff]  }
  0x80   : > { %v5312_v44 = vld [vmem:[#allocation5 + $0x110] sm:$0xff]   ;;  %v5319_v48 = vld [vmem:[%s6113_s4 + $0x98] ss:$36 sps:$4 sm:$0xff]   ;;  %v5324_v51 = vld [vmem:[%s6113_s4 + $0xe4] ss:$36 sps:$4 sm:$0xff]  }
  0x81   : > { %v5318_v47 = vld [vmem:[%s6113_s4 + $0x90] ss:$36 sps:$4 sm:$0xff]   ;;  %v5322_v50 = vld [vmem:[%s6113_s4 + $0xdc] ss:$36 sps:$4 sm:$0xff]   ;;  %v5330_v55 = vld [vmem:[%s6113_s4 + $0x124] ss:$36 sps:$4 sm:$0xff]  }
  0x82   : > { %2604 = vmatpush1.bf16.msra.mxu1 %v5274_v9  ;;  %2893 = vmatpush1.bf16.msra.mxu0 %v6144_v10  ;;  %v5326_v53 = vld [vmem:[%s6113_s4 + $0xd8] ss:$36 sps:$4 sm:$0xff]   ;;  %v5327_v54 = vld [vmem:[%s6113_s4 + $0xe0] ss:$36 sps:$4 sm:$0xff]   ;;  %v5328_v56 = vld [vmem:[#allocation5 + $0x130] sm:$0xff]  }
  0x83   : > { %2605 = vmatprep.subr.bf16.mxu1 %v5920_v0  ;;  %2894 = vmatprep.subr.bf16.mxu0 %v5920_v0  ;;  %v5332_v57 = vld [vmem:[%s6113_s4 + $0x12c] ss:$36 sps:$4 sm:$0xff]   ;;  %v5329_v58 = vld [vmem:[#allocation5 + $0x138] sm:$0xff]   ;;  %v5334_v59 = vld [vmem:[%s6113_s4 + $0x120] ss:$36 sps:$4 sm:$0xff]  }
  0x84   : > { %v5335_v60 = vld [vmem:[%s6113_s4 + $0x128] ss:$36 sps:$4 sm:$0xff]   ;;  %v5336_v61 = vld [vmem:[#allocation5 + $0x140] sm:$0xff]   ;;  %v5340_v63 = vld [vmem:[%s6113_s4 + $0x174] ss:$36 sps:$4 sm:$0xff]  }
  0x85   : > { %v5338_v62 = vld [vmem:[%s6113_s4 + $0x16c] ss:$36 sps:$4 sm:$0xff]   ;;  %v5345_v7 = vld [vmem:[#allocation5 + $0x158] sm:$0xff]  }
  0x86   : > { %2606 = vmatpush1.bf16.msra.mxu1 %v5276_v11  ;;  %2895 = vmatpush1.bf16.msra.mxu0 %v6149_v12  ;;  %v5337_v1 = vld [vmem:[#allocation5 + $0x148] sm:$0xff]   ;;  %v5343_v3 = vld [vmem:[%s6113_s4 + $0x170] ss:$36 sps:$4 sm:$0xff]   ;;  %v5351_v9 = vld [vmem:[%s6113_s4 + $0x1b8] ss:$36 sps:$4 sm:$0xff]  }
  0x87   : > { %2607 = vmatprep.subr.bf16.mxu1 %v5920_v0  ;;  %2896 = vmatprep.subr.bf16.mxu0 %v5920_v0  ;;  %v5344_v5 = vld [vmem:[#allocation5 + $0x150] sm:$0xff]   ;;  %v5354_v11 = vld [vmem:[%s6113_s4 + $0x1fc] ss:$36 sps:$4 sm:$0xff]  }
  0x88   : > { %v5361_v19 = vld [vmem:[#allocation5 + $0x178] sm:$0xff]   ;;  %v5364_v21 = vld [vmem:[%s6113_s4 + $0x10] ss:$36 sps:$4 sm:$0xff]  }
  0x8a   : > { %2608 = vmatpush1.bf16.msra.mxu1 %v5278_v13  ;;  %2897 = vmatpush1.bf16.msra.mxu0 %v6154_v14  ;;  %v5353_v13 = vld [vmem:[#allocation5 + $0x168] sm:$0xff]  }
  0x8b   : > { %2609 = vmatprep.subr.bf16.mxu1 %v5920_v0  ;;  %2898 = vmatprep.subr.bf16.mxu0 %v5920_v0 }
  0x8e   : > { %2610 = vmatpush1.bf16.msra.mxu1 %v5280_v15  ;;  %2899 = vmatpush1.bf16.msra.mxu0 %v6159_v16  ;;  %v5359_v15 = vld [vmem:[%s6113_s4 + $0x200] ss:$36 sps:$4 sm:$0xff]  }
  0x8f   : > { %2611 = vmatprep.subr.bf16.mxu1 %v5920_v0  ;;  %2900 = vmatprep.subr.bf16.mxu0 %v5920_v0 }
  0x92   : > { %2612 = vmatpush1.bf16.msra.mxu1 %v5282_v17  ;;  %2901 = vmatpush1.bf16.msra.mxu0 %v6164_v18  ;;  %v5360_v17 = vld [vmem:[#allocation5 + $0x170] sm:$0xff]  }
  0x93   : > { %2613 = vmatprep.subr.bf16.mxu1 %v5920_v0  ;;  %2902 = vmatprep.subr.bf16.mxu0 %v5920_v0 }
  0x96   : > { %2614 = vmatpush1.bf16.msra.mxu1 %v5284_v20  ;;  %2903 = vmatpush1.bf16.msra.mxu0 %v6171_v22  ;;  %v5367_v20 = vld [vmem:[%s6113_s4 + $0x240] ss:$36 sps:$4 sm:$0xff]  }
  0x97   : > { %2615 = vmatprep.subr.bf16.mxu1 %v5920_v0  ;;  %2904 = vmatprep.subr.bf16.mxu0 %v5920_v0 }
  0x9a   : > { %2616 = vmatpush1.bf16.msra.mxu1 %v5286_v23  ;;  %2905 = vmatpush1.bf16.msra.mxu0 %v6176_v24  ;;  %v5368_v23 = vld [vmem:[#allocation5 + $0x180] sm:$0xff]  }
  0x9b   : > { %2617 = vmatprep.subr.bf16.mxu1 %v5920_v0  ;;  %2906 = vmatprep.subr.bf16.mxu0 %v5920_v0 }
  0x9e   : > { %2618 = vmatpush1.bf16.msra.mxu1 %v5288_v25  ;;  %2907 = vmatpush1.bf16.msra.mxu0 %v6181_v26  ;;  %v5373_v25 = vld [vmem:[%s6113_s4 + $0x288] ss:$36 sps:$4 sm:$0xff]  }
  0x9f   : > { %2619 = vmatprep.subr.bf16.mxu1 %v5920_v0  ;;  %2908 = vmatprep.subr.bf16.mxu0 %v5920_v0 }
  0xa2   : > { %2620 = vmatpush1.bf16.msra.mxu1 %v5290_v27  ;;  %2909 = vmatpush1.bf16.msra.mxu0 %v6186_v28  ;;  %v5374_v27 = vld [vmem:[%s6113_s4 + $0x58] ss:$36 sps:$4 sm:$0xff]  }
  0xa3   : > { %2621 = vmatprep.subr.bf16.mxu1 %v5920_v0  ;;  %2910 = vmatprep.subr.bf16.mxu0 %v5920_v0 }
  0xa6   : > { %2622 = vmatpush1.bf16.msra.mxu1 %v5292_v29  ;;  %2911 = vmatpush1.bf16.msra.mxu0 %v6191_v30  ;;  %v5377_v29 = vld [vmem:[%s6113_s4 + $0xa4] ss:$36 sps:$4 sm:$0xff]  }
  0xa7   : > { %2623 = vmatprep.subr.bf16.mxu1 %v5920_v0  ;;  %2912 = vmatprep.subr.bf16.mxu0 %v5920_v0 }
  0xaa   : > { %2624 = vmatpush1.bf16.msra.mxu1 %v5294_v31  ;;  %2913 = vmatpush1.bf16.msra.mxu0 %v6196_v32  ;;  %v5379_v31 = vld [vmem:[%s6113_s4 + $0x2d0] ss:$36 sps:$4 sm:$0xff]  }
  0xab   : > { %2625 = vmatprep.subr.bf16.mxu1 %v5920_v0  ;;  %2914 = vmatprep.subr.bf16.mxu0 %v5920_v0 }
  0xae   : > { %2626 = vmatpush1.bf16.msra.mxu1 %v5296_v33  ;;  %2915 = vmatpush1.bf16.msra.mxu0 %v6201_v34  ;;  %v5380_v33 = vld [vmem:[%s6113_s4 + $0xa0] ss:$36 sps:$4 sm:$0xff]  }
  0xaf   : > { %4773 = vmatprep.subr.bf16.mxu1 %v5920_v0  ;;  %3173 = vmatprep.subr.bf16.mxu0 %v5920_v0 }
  0xb1   : > { %2628 = vmatmul.mubr.bf16.vlgmr.msra.gmra.mrb[0].mxu1 %v5298_v35  ;;  %2917 = vmatmul.mubr.bf16.vlgmr.msra.gmra.mrb[0].mxu0 %v5301_v36  ;;  %v5384_v35 = vld [vmem:[%s6113_s4 + $0xec] ss:$36 sps:$4 sm:$0xff]   ;;  %v5420_v36 = vld [vmem:[#allocation5 + $0x1a0] sm:$0xff]  }
  0xb2   : > { %4789 = vmatpush1.bf16.msra.mxu1 %v6125_v2  ;;  %3174 = vmatpush1.bf16.msra.mxu0 %v5304_v37  ;;  %v5342_v2 = vld [vmem:[%s6113_s4 + $0x168] ss:$36 sps:$4 sm:$0xff]  }
  0xb3   : > { %2635 = vmatprep.mubr.bf16.mxu1 %v5306_v38  ;;  %3175 = vmatprep.subr.bf16.mxu0 %v5920_v0  ;;  %v5433_v37 = vld [vmem:[#allocation5 + $0x1a8] sm:$0xff]   ;;  %v5386_v38 = vld [vmem:[%s6113_s4 + $0x318] ss:$36 sps:$4 sm:$0xff]  }
  0xb4   : > { %2924 = vmatprep.mubr.bf16.mxu0 %v5308_v39  ;;  %4774 = vmatprep.subr.bf16.mxu1 %v5920_v0  ;;  %v5387_v39 = vld [vmem:[%s6113_s4 + $0xe8] ss:$36 sps:$4 sm:$0xff]  }
  0xb6   : > { %4790 = vmatpush1.bf16.msra.mxu1 %v6129_v4  ;;  %3176 = vmatpush1.bf16.msra.mxu0 %v5305_v40  ;;  %v5346_v4 = vld [vmem:[%s6113_s4 + $0x1b4] ss:$36 sps:$4 sm:$0xff]   ;;  %v5388_v40 = vld [vmem:[%s6113_s4 + $0x364] ss:$36 sps:$4 sm:$0xff]  }
  0xb7   : > { %4775 = vmatprep.subr.bf16.mxu1 %v5920_v0  ;;  %3177 = vmatprep.subr.bf16.mxu0 %v5920_v0 }
  0xb9   : > { %2636 = vmatmul.mubr.bf16.gmra.mrb[4].mxu1 %v5310_v41  ;;  %2925 = vmatmul.mubr.bf16.gmra.mrb[4].mxu0 %v5311_v42  ;;  %v5390_v41 = vld [vmem:[%s6113_s4 + $0x134] ss:$36 sps:$4 sm:$0xff]  }
  0xba   : > { %2643 = vmatprep.mubr.bf16.mxu1 %v5314_v43  ;;  %3178 = vmatpush1.bf16.msra.mxu0 %v5312_v44  ;;  %v5446_v42 = vld [vmem:[#allocation5 + $0x1b0] sm:$0xff]   ;;  %v5459_v43 = vld [vmem:[#allocation5 + $0x1b8] sm:$0xff]   ;;  %v5392_v44 = vld [vmem:[%s6113_s4 + $0x360] ss:$36 sps:$4 sm:$0xff]  }
  0xbb   : > { %2932 = vmatprep.mubr.bf16.mxu0 %v5316_v45  ;;  %3179 = vmatprep.subr.bf16.mxu0 %v5920_v0  ;;  %v5393_v45 = vld [vmem:[%s6113_s4 + $0x130] ss:$36 sps:$4 sm:$0xff]  }
  0xbc   : > { %4791 = vmatpush1.bf16.msra.mxu1 %v6134_v6  ;;  %v5348_v6 = vld [vmem:[%s6113_s4 + $0x1bc] ss:$36 sps:$4 sm:$0xff]  }
  0xbd   : > { %4776 = vmatprep.subr.bf16.mxu1 %v5920_v0 }
  0xbe   : > { %3180 = vmatpush1.bf16.msra.mxu0 %v5313_v46  ;;  %v5395_v46 = vld [vmem:[%s6113_s4 + $0x3ac] ss:$36 sps:$4 sm:$0xff]  }
  0xbf   : > { %3181 = vmatprep.subr.bf16.mxu0 %v5920_v0 }
  0xc0   : > { %4792 = vmatpush1.bf16.msra.mxu1 %v6139_v8  ;;  %v5350_v8 = vld [vmem:[%s6113_s4 + $0x1b0] ss:$36 sps:$4 sm:$0xff]  }
  0xc1   : > { %2644 = vmatmul.mubr.bf16.gmra.mrb[8].mxu1 %v5318_v47  ;;  %4777 = vmatprep.subr.bf16.mxu1 %v5920_v0  ;;  %v5397_v47 = vld [vmem:[%s6113_s4 + $0x17c] ss:$36 sps:$4 sm:$0xff]  }
  0xc2   : > { %2933 = vmatmul.mubr.bf16.gmra.mrb[8].mxu0 %v5319_v48  ;;  %2651 = vmatprep.mubr.bf16.mxu1 %v5322_v50  ;;  %v5472_v48 = vld [vmem:[#allocation5 + $0x1c0] sm:$0xff]   ;;  %v5399_v50 = vld [vmem:[%s6113_s4 + $0x3a8] ss:$36 sps:$4 sm:$0xff]  }
  0xc3   : > { %3182 = vmatpush1.bf16.msra.mxu0 %v5320_v49  ;;  %2940 = vmatprep.mubr.bf16.mxu0 %v5324_v51  ;;  %v5485_v49 = vld [vmem:[#allocation5 + $0x1c8] sm:$0xff]   ;;  %v5400_v51 = vld [vmem:[%s6113_s4 + $0x178] ss:$36 sps:$4 sm:$0xff]  }
  0xc4   : > { %3183 = vmatprep.subr.bf16.mxu0 %v5920_v0  ;;  %4793 = vmatpush1.bf16.msra.mxu1 %v6144_v10  ;;  %v5352_v10 = vld [vmem:[#allocation5 + $0x160] sm:$0xff]  }
  0xc5   : > { %4778 = vmatprep.subr.bf16.mxu1 %v5920_v0 }
  0xc7   : > { %3184 = vmatpush1.bf16.msra.mxu0 %v5321_v52  ;;  %v5401_v52 = vld [vmem:[%s6113_s4 + $0x3f4] ss:$36 sps:$4 sm:$0xff]  }
  0xc8   : > { %3185 = vmatprep.subr.bf16.mxu0 %v5920_v0  ;;  %4794 = vmatpush1.bf16.msra.mxu1 %v6149_v12  ;;  %v5356_v12 = vld [vmem:[%s6113_s4 + $0x204] ss:$36 sps:$4 sm:$0xff]  }
  0xc9   : > { %2652 = vmatmul.mubr.bf16.gmra.mrb[12].mxu1 %v5326_v53  ;;  %4779 = vmatprep.subr.bf16.mxu1 %v5920_v0  ;;  %v5403_v53 = vld [vmem:[%s6113_s4 + $0x1c4] ss:$36 sps:$4 sm:$0xff]  }
  0xca   : > { %2941 = vmatmul.mubr.bf16.gmra.mrb[12].mxu0 %v5327_v54  ;;  %2659 = vmatprep.mubr.bf16.mxu1 %v5330_v55  ;;  %v5498_v54 = vld [vmem:[#allocation5 + $0x1d0] sm:$0xff]  }
  0xcb   : > { %3186 = vmatpush1.bf16.msra.mxu0 %v5328_v56  ;;  %2948 = vmatprep.mubr.bf16.mxu0 %v5332_v57  ;;  %v5405_v55 = vld [vmem:[%s6113_s4 + $0x3f0] ss:$36 sps:$4 sm:$0xff]   ;;  %v5406_v56 = vld [vmem:[%s6113_s4 + $0x1c0] ss:$36 sps:$4 sm:$0xff]  }
  0xcc   : > { %3187 = vmatprep.subr.bf16.mxu0 %v5920_v0  ;;  %4795 = vmatpush1.bf16.msra.mxu1 %v6154_v14  ;;  %v5358_v14 = vld [vmem:[%s6113_s4 + $0x1f8] ss:$36 sps:$4 sm:$0xff]  }
  0xcd   : > { %4780 = vmatprep.subr.bf16.mxu1 %v5920_v0  ;;  %v5408_v57 = vld [vmem:[%s6113_s4 + $0x43c] ss:$36 sps:$4 sm:$0xff]  }
  0xcf   : > { %3188 = vmatpush1.bf16.msra.mxu0 %v5329_v58  ;;  %v5410_v58 = vld [vmem:[%s6113_s4 + $0x20c] ss:$36 sps:$4 sm:$0xff]  }
  0xd0   : > { %3189 = vmatprep.subr.bf16.mxu0 %v5920_v0  ;;  %4796 = vmatpush1.bf16.msra.mxu1 %v6159_v16  ;;  %v5362_v16 = vld [vmem:[%s6113_s4 + $0x244] ss:$36 sps:$4 sm:$0xff]  }
  0xd1   : > { %2660 = vmatmul.mubr.bf16.gmra.mrb[16].mxu1 %v5334_v59  ;;  %4781 = vmatprep.subr.bf16.mxu1 %v5920_v0  ;;  %v5511_v59 = vld [vmem:[#allocation5 + $0x1d8] sm:$0xff]  }
  0xd2   : > { %2949 = vmatmul.mubr.bf16.gmra.mrb[16].mxu0 %v5335_v60  ;;  %2667 = vmatprep.mubr.bf16.mxu1 %v5338_v62  ;;  %v5412_v60 = vld [vmem:[%s6113_s4 + $0x438] ss:$36 sps:$4 sm:$0xff]   ;;  %v5414_v62 = vld [vmem:[%s6113_s4 + $0x484] ss:$36 sps:$4 sm:$0xff]  }
  0xd3   : > { %3190 = vmatpush1.bf16.msra.mxu0 %v5336_v61  ;;  %2956 = vmatprep.mubr.bf16.mxu0 %v5340_v63  ;;  %v5413_v61 = vld [vmem:[%s6113_s4 + $0x208] ss:$36 sps:$4 sm:$0xff]   ;;  %v5416_v63 = vld [vmem:[%s6113_s4 + $0x254] ss:$36 sps:$4 sm:$0xff]  }
  0xd4   : > { %3191 = vmatprep.subr.bf16.mxu0 %v5920_v0  ;;  %4797 = vmatpush1.bf16.msra.mxu1 %v6164_v18  ;;  %v5366_v18 = vld [vmem:[%s6113_s4 + $0x14] ss:$36 sps:$4 sm:$0xff]  }
  0xd5   : > { %4782 = vmatprep.subr.bf16.mxu1 %v5920_v0 }
  0xd7   : > { %3192 = vmatpush1.bf16.msra.mxu0 %v5337_v1  ;;  %v5418_v1 = vld [vmem:[%s6113_s4 + $0x480] ss:$36 sps:$4 sm:$0xff]  }
  0xd8   : > { %3193 = vmatprep.subr.bf16.mxu0 %v5920_v0  ;;  %4798 = vmatpush1.bf16.msra.mxu1 %v6171_v22  ;;  %v5369_v22 = vld [vmem:[%s6113_s4 + $0x28c] ss:$36 sps:$4 sm:$0xff]  }
  0xd9   : > { %2668 = vmatmul.mubr.bf16.gmra.mrb[20].mxu1 %v5342_v2  ;;  %4783 = vmatprep.subr.bf16.mxu1 %v5920_v0  ;;  %v5419_v2 = vld [vmem:[%s6113_s4 + $0x250] ss:$36 sps:$4 sm:$0xff]  }
  0xda   : > { %2957 = vmatmul.mubr.bf16.gmra.mrb[20].mxu0 %v5343_v3  ;;  %2675 = vmatprep.mubr.bf16.mxu1 %v5346_v4  ;;  %v5421_v3 = vld [vmem:[%s6113_s4 + $0x4cc] ss:$36 sps:$4 sm:$0xff]   ;;  %v5423_v4 = vld [vmem:[%s6113_s4 + $0x29c] ss:$36 sps:$4 sm:$0xff]  }
  0xdb   : > { %3194 = vmatpush1.bf16.msra.mxu0 %v5344_v5  ;;  %2964 = vmatprep.mubr.bf16.mxu0 %v5348_v6  ;;  %v5524_v5 = vld [vmem:[#allocation5 + $0x1e0] sm:$0xff]  }
  0xdc   : > { %3195 = vmatprep.subr.bf16.mxu0 %v5920_v0  ;;  %4799 = vmatpush1.bf16.msra.mxu1 %v6176_v24  ;;  %v5371_v24 = vld [vmem:[%s6113_s4 + $0x5c] ss:$36 sps:$4 sm:$0xff]  }
  0xdd   : > { %4784 = vmatprep.subr.bf16.mxu1 %v5920_v0  ;;  %v6334_v6 = vld [vmem:[#allocation5 + $0x200] sm:$0xff]  }
  0xdf   : > { %3196 = vmatpush1.bf16.msra.mxu0 %v5345_v7  ;;  %v5425_v7 = vld [vmem:[%s6113_s4 + $0x4c8] ss:$36 sps:$4 sm:$0xff]  }
  0xe0   : > { %3197 = vmatprep.subr.bf16.mxu0 %v5920_v0  ;;  %4800 = vmatpush1.bf16.msra.mxu1 %v6181_v26  ;;  %v5381_v26 = vld [vmem:[#allocation5 + $0x188] sm:$0xff]  }
  0xe1   : > { %2676 = vmatmul.mubr.bf16.gmra.mrb[24].mxu1 %v5350_v8  ;;  %4785 = vmatprep.subr.bf16.mxu1 %v5920_v0  ;;  %v5426_v8 = vld [vmem:[%s6113_s4 + $0x298] ss:$36 sps:$4 sm:$0xff]  }
  0xe2   : > { %2965 = vmatmul.mubr.bf16.gmra.mrb[24].mxu0 %v5351_v9  ;;  %2683 = vmatprep.mubr.bf16.mxu1 %v5354_v11  ;;  %v5427_v9 = vld [vmem:[%s6113_s4 + $0x514] ss:$36 sps:$4 sm:$0xff]  }
  0xe3   : > { %3198 = vmatpush1.bf16.msra.mxu0 %v5352_v10  ;;  %2972 = vmatprep.mubr.bf16.mxu0 %v5356_v12  ;;  %v5429_v10 = vld [vmem:[%s6113_s4 + $0x2e4] ss:$36 sps:$4 sm:$0xff]   ;;  %v5431_v11 = vld [vmem:[%s6113_s4 + $0x510] ss:$36 sps:$4 sm:$0xff]  }
  0xe4   : > { %3199 = vmatprep.subr.bf16.mxu0 %v5920_v0  ;;  %4801 = vmatpush1.bf16.msra.mxu1 %v6186_v28  ;;  %v5375_v28 = vld [vmem:[%s6113_s4 + $0x2d4] ss:$36 sps:$4 sm:$0xff]   ;;  %v5432_v12 = vld [vmem:[%s6113_s4 + $0x2e0] ss:$36 sps:$4 sm:$0xff]  }
  0xe5   : > { %4786 = vmatprep.subr.bf16.mxu1 %v5920_v0 }
  0xe7   : > { %3200 = vmatpush1.bf16.msra.mxu0 %v5353_v13  ;;  %v5434_v13 = vld [vmem:[%s6113_s4 + $0x55c] ss:$36 sps:$4 sm:$0xff]  }
  0xe8   : > { %3201 = vmatprep.subr.bf16.mxu0 %v5920_v0  ;;  %4802 = vmatpush1.bf16.msra.mxu1 %v6191_v30  ;;  %v5394_v30 = vld [vmem:[#allocation5 + $0x190] sm:$0xff]  }
  0xe9   : > { %2684 = vmatmul.mubr.bf16.gmra.mrb[28].mxu1 %v5358_v14  ;;  %4787 = vmatprep.subr.bf16.mxu1 %v5920_v0  ;;  %v5436_v14 = vld [vmem:[%s6113_s4 + $0x32c] ss:$36 sps:$4 sm:$0xff]  }
  0xea   : > { %2973 = vmatmul.mubr.bf16.gmra.mrb[28].mxu0 %v5359_v15  ;;  %2691 = vmatprep.mubr.bf16.mxu1 %v5362_v16  ;;  %v5538_v15 = vld [vmem:[#allocation5 + $0x1e8] sm:$0xff]   ;;  %v5438_v16 = vld [vmem:[%s6113_s4 + $0x558] ss:$36 sps:$4 sm:$0xff]  }
  0xeb   : > { %3202 = vmatpush1.bf16.msra.mxu0 %v5360_v17  ;;  %3205 = vmatprep.mubr.bf16.mxu0 %v5366_v18  ;;  %v5439_v17 = vld [vmem:[%s6113_s4 + $0x328] ss:$36 sps:$4 sm:$0xff]  }
  0xec   : > { %3203 = vmatprep.subr.bf16.mxu0 %v5920_v0  ;;  %4803 = vmatpush1.bf16.msra.mxu1 %v6196_v32  ;;  %v5407_v32 = vld [vmem:[#allocation5 + $0x198] sm:$0xff]   ;;  %v5440_v18 = vld [vmem:[%s6113_s4 + $0x5a4] ss:$36 sps:$4 sm:$0xff]  }
  0xed   : > { %4788 = vmatprep.subr.bf16.mxu1 %v5920_v0 }
  0xef   : > { %3204 = vmatpush1.bf16.msra.mxu0 %v5361_v19  ;;  %v5442_v19 = vld [vmem:[%s6113_s4 + $0x374] ss:$36 sps:$4 sm:$0xff]  }
  0xf0   : > { %3462 = vmatprep.subr.bf16.mxu0 %v5920_v0  ;;  %4804 = vmatpush1.bf16.msra.mxu1 %v6201_v34  ;;  %v5382_v34 = vld [vmem:[%s6113_s4 + $0x31c] ss:$36 sps:$4 sm:$0xff]  }
  0xf1   : > { %2692 = vmatmul.mubr.bf16.gmra.mrb[32].mxu1 %v5367_v20  ;;  %4693 = vmatprep.subr.bf16.mxu1 %v6334_v6  ;;  %v5444_v20 = vld [vmem:[%s6113_s4 + $0x5a0] ss:$36 sps:$4 sm:$0xff]  }
  0xf2   : > { %3206 = vmatmul.mubr.bf16.vlgmr.msra.gmra.mrb[0].mxu0 %v5364_v21  ;;  %2699 = vmatprep.mubr.bf16.mxu1 %v5369_v22  ;;  %v5445_v21 = vld [vmem:[%s6113_s4 + $0x370] ss:$36 sps:$4 sm:$0xff]  }
  0xf3   : > { %3463 = vmatpush1.bf16.msra.mxu0 %v5368_v23  ;;  %3213 = vmatprep.mubr.bf16.mxu0 %v5371_v24  ;;  %v5447_v22 = vld [vmem:[%s6113_s4 + $0x5ec] ss:$36 sps:$4 sm:$0xff]   ;;  %v5449_v23 = vld [vmem:[%s6113_s4 + $0x3bc] ss:$36 sps:$4 sm:$0xff]  }
  0xf4   : > { %3464 = vmatprep.subr.bf16.mxu0 %v5920_v0  ;;  %v5552_v24 = vld [vmem:[#allocation5 + $0x1f0] sm:$0xff]  }
  0xf7   : > { %3465 = vmatpush1.bf16.msra.mxu0 %v5381_v26  ;;  %v5452_v26 = vld [vmem:[%s6113_s4 + $0x3b8] ss:$36 sps:$4 sm:$0xff]  }
  0xf8   : > { %3466 = vmatprep.subr.bf16.mxu0 %v5920_v0 }
  0xf9   : > { %2700 = vmatmul.mubr.bf16.gmra.mrb[36].mxu1 %v5373_v25  ;;  %v5451_v25 = vld [vmem:[%s6113_s4 + $0x5e8] ss:$36 sps:$4 sm:$0xff]  }
  0xfa   : > { %3214 = vmatmul.mubr.bf16.gmra.mrb[4].mxu0 %v5374_v27  ;;  %2707 = vmatprep.mubr.bf16.mxu1 %v5375_v28  ;;  %v5453_v27 = vld [vmem:[%s6113_s4 + $0x634] ss:$36 sps:$4 sm:$0xff]   ;;  %v5455_v28 = vld [vmem:[%s6113_s4 + $0x404] ss:$36 sps:$4 sm:$0xff]  }
  0xfb   : > { %3221 = vmatprep.mubr.bf16.mxu0 %v5377_v29  ;;  %3467 = vmatpush1.bf16.msra.mxu0 %v5394_v30  ;;  %v5457_v29 = vld [vmem:[%s6113_s4 + $0x630] ss:$36 sps:$4 sm:$0xff]   ;;  %v5458_v30 = vld [vmem:[%s6113_s4 + $0x400] ss:$36 sps:$4 sm:$0xff]  }
  0xfc   : > { %3468 = vmatprep.subr.bf16.mxu0 %v5920_v0 }
  0xff   : > { %3469 = vmatpush1.bf16.msra.mxu0 %v5407_v32  ;;  %v5462_v32 = vld [vmem:[%s6113_s4 + $0x44c] ss:$36 sps:$4 sm:$0xff]  }
 0x100   : > { %3470 = vmatprep.subr.bf16.mxu0 %v5920_v0 }
 0x101   : > { %2708 = vmatmul.mubr.bf16.gmra.mrb[40].mxu1 %v5379_v31  ;;  %v5460_v31 = vld [vmem:[%s6113_s4 + $0x67c] ss:$36 sps:$4 sm:$0xff]  }
 0x102   : > { %3222 = vmatmul.mubr.bf16.gmra.mrb[8].mxu0 %v5380_v33  ;;  %2715 = vmatprep.mubr.bf16.mxu1 %v5382_v34  ;;  %v5464_v33 = vld [vmem:[%s6113_s4 + $0x678] ss:$36 sps:$4 sm:$0xff]   ;;  %v5465_v34 = vld [vmem:[%s6113_s4 + $0x448] ss:$36 sps:$4 sm:$0xff]  }
 0x103   : > { %3229 = vmatprep.mubr.bf16.mxu0 %v5384_v35  ;;  %3471 = vmatpush1.bf16.msra.mxu0 %v5420_v36  ;;  %v5466_v35 = vld [vmem:[%s6113_s4 + $0x6c4] ss:$36 sps:$4 sm:$0xff]   ;;  %v5468_v36 = vld [vmem:[%s6113_s4 + $0x494] ss:$36 sps:$4 sm:$0xff]  }
 0x104   : > { %3472 = vmatprep.subr.bf16.mxu0 %v5920_v0 }
 0x107   : > { %3473 = vmatpush1.bf16.msra.mxu0 %v5433_v37  ;;  %v5470_v37 = vld [vmem:[%s6113_s4 + $0x6c0] ss:$36 sps:$4 sm:$0xff]  }
 0x108   : > { %3474 = vmatprep.subr.bf16.mxu0 %v5920_v0 }
 0x109   : > { %2716 = vmatmul.mubr.bf16.gmra.mrb[44].mxu1 %v5386_v38  ;;  %v5471_v38 = vld [vmem:[%s6113_s4 + $0x490] ss:$36 sps:$4 sm:$0xff]  }
 0x10a   : > { %3230 = vmatmul.mubr.bf16.gmra.mrb[12].mxu0 %v5387_v39  ;;  %2723 = vmatprep.mubr.bf16.mxu1 %v5388_v40  ;;  %v5473_v39 = vld [vmem:[%s6113_s4 + $0x70c] ss:$36 sps:$4 sm:$0xff]   ;;  %v5475_v40 = vld [vmem:[%s6113_s4 + $0x4dc] ss:$36 sps:$4 sm:$0xff]  }
 0x10b   : > { %3237 = vmatprep.mubr.bf16.mxu0 %v5390_v41  ;;  %3475 = vmatpush1.bf16.msra.mxu0 %v5446_v42  ;;  %v5477_v41 = vld [vmem:[%s6113_s4 + $0x708] ss:$36 sps:$4 sm:$0xff]   ;;  %v5478_v42 = vld [vmem:[%s6113_s4 + $0x4d8] ss:$36 sps:$4 sm:$0xff]  }
 0x10c   : > { %3476 = vmatprep.subr.bf16.mxu0 %v5920_v0 }
 0x10f   : > { %3477 = vmatpush1.bf16.msra.mxu0 %v5459_v43  ;;  %v5479_v43 = vld [vmem:[%s6113_s4 + $0x754] ss:$36 sps:$4 sm:$0xff]  }
 0x110   : > { %3478 = vmatprep.subr.bf16.mxu0 %v5920_v0 }
 0x111   : > { %2724 = vmatmul.mubr.bf16.gmra.mrb[48].mxu1 %v5392_v44  ;;  %v5481_v44 = vld [vmem:[%s6113_s4 + $0x524] ss:$36 sps:$4 sm:$0xff]  }
 0x112   : > { %3238 = vmatmul.mubr.bf16.gmra.mrb[16].mxu0 %v5393_v45  ;;  %2731 = vmatprep.mubr.bf16.mxu1 %v5395_v46  ;;  %v5483_v45 = vld [vmem:[%s6113_s4 + $0x750] ss:$36 sps:$4 sm:$0xff]   ;;  %v5484_v46 = vld [vmem:[%s6113_s4 + $0x520] ss:$36 sps:$4 sm:$0xff]  }
 0x113   : > { %3245 = vmatprep.mubr.bf16.mxu0 %v5397_v47  ;;  %3479 = vmatpush1.bf16.msra.mxu0 %v5472_v48  ;;  %v5486_v47 = vld [vmem:[%s6113_s4 + $0x79c] ss:$36 sps:$4 sm:$0xff]   ;;  %v5488_v48 = vld [vmem:[%s6113_s4 + $0x56c] ss:$36 sps:$4 sm:$0xff]  }
 0x114   : > { %3480 = vmatprep.subr.bf16.mxu0 %v5920_v0 }
 0x117   : > { %3481 = vmatpush1.bf16.msra.mxu0 %v5485_v49 }
 0x118   : > { %3482 = vmatprep.subr.bf16.mxu0 %v5920_v0 }
 0x119   : > { %2732 = vmatmul.mubr.bf16.gmra.mrb[52].mxu1 %v5399_v50 }
 0x11a   : > { %3246 = vmatmul.mubr.bf16.gmra.mrb[20].mxu0 %v5400_v51  ;;  %2739 = vmatprep.mubr.bf16.mxu1 %v5401_v52  ;;  %v5490_v51 = vld [vmem:[%s6113_s4 + $0x798] ss:$36 sps:$4 sm:$0xff]  }
 0x11b   : > { %3253 = vmatprep.mubr.bf16.mxu0 %v5403_v53  ;;  %3483 = vmatpush1.bf16.msra.mxu0 %v5498_v54  ;;  %v5491_v53 = vld [vmem:[%s6113_s4 + $0x568] ss:$36 sps:$4 sm:$0xff]  }
 0x11c   : > { %3484 = vmatprep.subr.bf16.mxu0 %v5920_v0  ;;  %v5492_v54 = vld [vmem:[%s6113_s4 + $0x7e4] ss:$36 sps:$4 sm:$0xff]  }
 0x11f   : > { %3485 = vmatpush1.bf16.msra.mxu0 %v5511_v59  ;;  %v5496_v59 = vld [vmem:[%s6113_s4 + $0x7e0] ss:$36 sps:$4 sm:$0xff]  }
 0x120   : > { %3486 = vmatprep.subr.bf16.mxu0 %v5920_v0 }
 0x121   : > { %2740 = vmatmul.mubr.bf16.gmra.mrb[56].mxu1 %v5405_v55 }
 0x122   : > { %3254 = vmatmul.mubr.bf16.gmra.mrb[24].mxu0 %v5406_v56  ;;  %2747 = vmatprep.mubr.bf16.mxu1 %v5408_v57  ;;  %v5494_v56 = vld [vmem:[%s6113_s4 + $0x5b4] ss:$36 sps:$4 sm:$0xff]  }
 0x123   : > { %3261 = vmatprep.mubr.bf16.mxu0 %v5410_v58  ;;  %3487 = vmatpush1.bf16.msra.mxu0 %v5524_v5 }
 0x124   : > { %3488 = vmatprep.subr.bf16.mxu0 %v5920_v0 }
 0x127   : > { %3489 = vmatpush1.bf16.msra.mxu0 %v5538_v15  ;;  %v5510_v15 = vld [vmem:[%s6113_s4 + $0x640] ss:$36 sps:$4 sm:$0xff]  }
 0x128   : > { %3490 = vmatprep.subr.bf16.mxu0 %v5920_v0 }
 0x129   : > { %2748 = vmatmul.mubr.bf16.gmra.mrb[60].mxu1 %v5412_v60 }
 0x12a   : > { %3262 = vmatmul.mubr.bf16.gmra.mrb[28].mxu0 %v5413_v61  ;;  %2755 = vmatprep.mubr.bf16.mxu1 %v5414_v62  ;;  %v5497_v61 = vld [vmem:[%s6113_s4 + $0x5b0] ss:$36 sps:$4 sm:$0xff]  }
 0x12b   : > { %3269 = vmatprep.mubr.bf16.mxu0 %v5416_v63  ;;  %3491 = vmatpush1.bf16.msra.mxu0 %v5552_v24  ;;  %v5499_v62 = vld [vmem:[%s6113_s4 + $0x82c] ss:$36 sps:$4 sm:$0xff]  }
 0x12c   : > { %3492 = vmatprep.subr.bf16.mxu0 %v5920_v0  ;;  %v5565_v0 = vld [vmem:[#allocation5 + $0x1f8] sm:$0xff]   ;;  %v5520_v24 = vld [vmem:[%s6113_s4 + $0x24c] ss:$36 sps:$4 sm:$0xff]  }
 0x12f   : > { %3493 = vmatpush1.bf16.msra.mxu0 %v5565_v0  ;;  %v5526_v0 = vld [vmem:[%s6113_s4 + $0x294] ss:$36 sps:$4 sm:$0xff]  }
 0x131   : > { %2756 = vmatmul.mubr.bf16.gmra.mrb[64].mxu1 %v5418_v1  ;;  %v5501_v1 = vld [vmem:[%s6113_s4 + $0x5fc] ss:$36 sps:$4 sm:$0xff]  }
 0x132   : > { %3270 = vmatmul.mubr.bf16.gmra.mrb[32].mxu0 %v5419_v2  ;;  %2763 = vmatprep.mubr.bf16.mxu1 %v5421_v3 }
 0x133   : > { %3277 = vmatprep.mubr.bf16.mxu0 %v5423_v4  ;;  %v5503_v4 = vld [vmem:[%s6113_s4 + $0x828] ss:$36 sps:$4 sm:$0xff]  }
 0x139   : > { %2764 = vmatmul.mubr.bf16.gmra.mrb[68].mxu1 %v5425_v7  ;;  %v5504_v7 = vld [vmem:[%s6113_s4 + $0x5f8] ss:$36 sps:$4 sm:$0xff]  }
 0x13a   : > { %3278 = vmatmul.mubr.bf16.gmra.mrb[36].mxu0 %v5426_v8  ;;  %2771 = vmatprep.mubr.bf16.mxu1 %v5427_v9  ;;  %v5505_v8 = vld [vmem:[%s6113_s4 + $0x874] ss:$36 sps:$4 sm:$0xff]  }
 0x13b   : > { %3285 = vmatprep.mubr.bf16.mxu0 %v5429_v10  ;;  %v5507_v10 = vld [vmem:[%s6113_s4 + $0x644] ss:$36 sps:$4 sm:$0xff]  }
 0x141   : > { %2772 = vmatmul.mubr.bf16.gmra.mrb[72].mxu1 %v5431_v11 }
 0x142   : > { %3286 = vmatmul.mubr.bf16.gmra.mrb[40].mxu0 %v5432_v12  ;;  %2779 = vmatprep.mubr.bf16.mxu1 %v5434_v13  ;;  %v5509_v13 = vld [vmem:[%s6113_s4 + $0x870] ss:$36 sps:$4 sm:$0xff]  }
 0x143   : > { %3293 = vmatprep.mubr.bf16.mxu0 %v5436_v14 }
 0x149   : > { %2780 = vmatmul.mubr.bf16.gmra.mrb[76].mxu1 %v5438_v16  ;;  %v5512_v16 = vld [vmem:[%s6113_s4 + $0x8bc] ss:$36 sps:$4 sm:$0xff]  }
 0x14a   : > { %3294 = vmatmul.mubr.bf16.gmra.mrb[44].mxu0 %v5439_v17  ;;  %2787 = vmatprep.mubr.bf16.mxu1 %v5440_v18  ;;  %v5514_v18 = vld [vmem:[%s6113_s4 + $0x68c] ss:$36 sps:$4 sm:$0xff]  }
 0x14b   : > { %3301 = vmatprep.mubr.bf16.mxu0 %v5442_v19 }
 0x151   : > { %2788 = vmatmul.mubr.bf16.gmra.mrb[80].mxu1 %v5444_v20 }
 0x152   : > { %3302 = vmatmul.mubr.bf16.gmra.mrb[48].mxu0 %v5445_v21  ;;  %2795 = vmatprep.mubr.bf16.mxu1 %v5447_v22  ;;  %v5516_v21 = vld [vmem:[%s6113_s4 + $0x8b8] ss:$36 sps:$4 sm:$0xff]  }
 0x153   : > { %3309 = vmatprep.mubr.bf16.mxu0 %v5449_v23  ;;  %v5517_v23 = vld [vmem:[%s6113_s4 + $0x688] ss:$36 sps:$4 sm:$0xff]  }
 0x159   : > { %2796 = vmatmul.mubr.bf16.gmra.mrb[84].mxu1 %v5451_v25 }
 0x15a   : > { %3310 = vmatmul.mubr.bf16.gmra.mrb[52].mxu0 %v5452_v26  ;;  %2803 = vmatprep.mubr.bf16.mxu1 %v5453_v27  ;;  %v5521_v26 = vld [vmem:[%s6113_s4 + $0x6d4] ss:$36 sps:$4 sm:$0xff]  }
 0x15b   : > { %3317 = vmatprep.mubr.bf16.mxu0 %v5455_v28 }
 0x161   : > { %2804 = vmatmul.mubr.bf16.gmra.mrb[88].mxu1 %v5457_v29  ;;  %v5518_v29 = vld [vmem:[%s6113_s4 + $0x248] ss:$36 sps:$4 sm:$0xff]  }
 0x162   : > { %3318 = vmatmul.mubr.bf16.gmra.mrb[56].mxu0 %v5458_v30  ;;  %2811 = vmatprep.mubr.bf16.mxu1 %v5460_v31  ;;  %v5523_v31 = vld [vmem:[%s6113_s4 + $0x6d0] ss:$36 sps:$4 sm:$0xff]  }
 0x163   : > { %3325 = vmatprep.mubr.bf16.mxu0 %v5462_v32 }
 0x169   : > { %2812 = vmatmul.mubr.bf16.gmra.mrb[92].mxu1 %v5464_v33  ;;  %v5528_v33 = vld [vmem:[%s6113_s4 + $0x71c] ss:$36 sps:$4 sm:$0xff]  }
 0x16a   : > { %3326 = vmatmul.mubr.bf16.gmra.mrb[60].mxu0 %v5465_v34  ;;  %2819 = vmatprep.mubr.bf16.mxu1 %v5466_v35  ;;  %v5545_v34 = vld [vmem:[#allocation5 + $0x208] sm:$0xff]   ;;  %v5566_v35 = vld [vmem:[#allocation5 + $0x210] sm:$0xff]  }
 0x16b   : > { %3333 = vmatprep.mubr.bf16.mxu0 %v5468_v36 }
 0x171   : > { %2820 = vmatmul.mubr.bf16.gmra.mrb[96].mxu1 %v5470_v37 }
 0x172   : > { %3334 = vmatmul.mubr.bf16.gmra.mrb[64].mxu0 %v5471_v38  ;;  %2827 = vmatprep.mubr.bf16.mxu1 %v5473_v39  ;;  %v5530_v38 = vld [vmem:[%s6113_s4 + $0x290] ss:$36 sps:$4 sm:$0xff]  }
 0x173   : > { %3341 = vmatprep.mubr.bf16.mxu0 %v5475_v40  ;;  %v5531_v40 = vld [vmem:[%s6113_s4 + $0x718] ss:$36 sps:$4 sm:$0xff]  }
 0x179   : > { %2828 = vmatmul.mubr.bf16.gmra.mrb[100].mxu1 %v5477_v41  ;;  %v5532_v41 = vld [vmem:[%s6113_s4 + $0x2dc] ss:$36 sps:$4 sm:$0xff]  }
 0x17a   : > { %3342 = vmatmul.mubr.bf16.gmra.mrb[68].mxu0 %v5478_v42  ;;  %2835 = vmatprep.mubr.bf16.mxu1 %v5479_v43  ;;  %v5534_v43 = vld [vmem:[%s6113_s4 + $0x764] ss:$36 sps:$4 sm:$0xff]  }
 0x17b   : > { %3349 = vmatprep.mubr.bf16.mxu0 %v5481_v44 }
 0x181   : > { %2836 = vmatmul.mubr.bf16.gmra.mrb[104].mxu1 %v5483_v45  ;;  %v5604_v45 = vld [vmem:[#allocation5 + $0x220] sm:$0xff]  }
 0x182   : > { %3350 = vmatmul.mubr.bf16.gmra.mrb[72].mxu0 %v5484_v46  ;;  %2843 = vmatprep.mubr.bf16.mxu1 %v5486_v47  ;;  %v5536_v47 = vld [vmem:[%s6113_s4 + $0x2d8] ss:$36 sps:$4 sm:$0xff]  }
 0x183   : > { %3357 = vmatprep.mubr.bf16.mxu0 %v5488_v48 }
 0x184   : > { %v6380_v49 = vpop.f32.mrb[0].mxu1 }
 0x185   : > { %v2631_v50 = vpop.f32.mrb[1].mxu1 }
 0x186   : > { %v6383_v52 = vpop.f32.mrb[2].mxu1  ;;  %v5537_v50 = vld [vmem:[%s6113_s4 + $0x760] ss:$36 sps:$4 sm:$0xff]  }
 0x187   : > { %v2634_v55 = vpop.f32.mrb[3].mxu1 }
 0x188   : > { %v5623_v55 = vld [vmem:[#allocation5 + $0x228] sm:$0xff]  }
 0x189   : > { %2844 = vmatmul.mubr.bf16.gmra.mrb[108].mxu1 %v5490_v51  ;;  %v5539_v51 = vld [vmem:[%s6113_s4 + $0x324] ss:$36 sps:$4 sm:$0xff]  }
 0x18a   : > { %3358 = vmatmul.mubr.bf16.gmra.mrb[76].mxu0 %v5491_v53  ;;  %2851 = vmatprep.mubr.bf16.mxu1 %v5492_v54  ;;  %v5541_v54 = vld [vmem:[%s6113_s4 + $0x7ac] ss:$36 sps:$4 sm:$0xff]  }
 0x18b   : > { %3365 = vmatprep.mubr.bf16.mxu0 %v5494_v56  ;;  %v5642_v56 = vld [vmem:[#allocation5 + $0x230] sm:$0xff]  }
 0x18c   : > { %v6388_v57 = vpop.f32.mrb[4].mxu1 }
 0x18d   : > { %v2639_v58 = vpop.f32.mrb[5].mxu1 }
 0x18e   : > { %v6391_v60 = vpop.f32.mrb[6].mxu1  ;;  %v5543_v58 = vld [vmem:[%s6113_s4 + $0x320] ss:$36 sps:$4 sm:$0xff]  }
 0x18f   : > { %v2642_v63 = vpop.f32.mrb[7].mxu1 }
 0x190   : > { %v5550_v63 = vld [vmem:[%s6113_s4 + $0x368] ss:$36 sps:$4 sm:$0xff]  }
 0x191   : > { %2852 = vmatmul.mubr.bf16.gmra.mrb[112].mxu1 %v5496_v59  ;;  %v5544_v59 = vld [vmem:[%s6113_s4 + $0x7a8] ss:$36 sps:$4 sm:$0xff]  }
 0x192   : > { %3366 = vmatmul.mubr.bf16.gmra.mrb[80].mxu0 %v5497_v61  ;;  %2859 = vmatprep.mubr.bf16.mxu1 %v5499_v62  ;;  %v5546_v61 = vld [vmem:[%s6113_s4 + $0x36c] ss:$36 sps:$4 sm:$0xff]   ;;  %v5548_v62 = vld [vmem:[%s6113_s4 + $0x7f4] ss:$36 sps:$4 sm:$0xff]  }
 0x193   : > { %3373 = vmatprep.mubr.bf16.mxu0 %v5501_v1  ;;  %v5551_v1 = vld [vmem:[%s6113_s4 + $0x7f0] ss:$36 sps:$4 sm:$0xff]  }
 0x194   : > { %v6396_v2 = vpop.f32.mrb[8].mxu1 }
 0x195   : > { %v2647_v3 = vpop.f32.mrb[9].mxu1 }
 0x196   : > { %v6399_v5 = vpop.f32.mrb[10].mxu1  ;;  %v5553_v3 = vld [vmem:[%s6113_s4 + $0x3b4] ss:$36 sps:$4 sm:$0xff]  }
 0x197   : > { %v2650_v9 = vpop.f32.mrb[11].mxu1 }
 0x198   : > { %v5559_v9 = vld [vmem:[%s6113_s4 + $0x3fc] ss:$36 sps:$4 sm:$0xff]  }
 0x199   : > { %2860 = vmatmul.mubr.bf16.gmra.mrb[116].mxu1 %v5503_v4  ;;  %v5555_v4 = vld [vmem:[%s6113_s4 + $0x83c] ss:$36 sps:$4 sm:$0xff]  }
 0x19a   : > { %3374 = vmatmul.mubr.bf16.gmra.mrb[84].mxu0 %v5504_v7  ;;  %2867 = vmatprep.mubr.bf16.mxu1 %v5505_v8  ;;  %v5557_v7 = vld [vmem:[%s6113_s4 + $0x3b0] ss:$36 sps:$4 sm:$0xff]   ;;  %v5558_v8 = vld [vmem:[%s6113_s4 + $0x838] ss:$36 sps:$4 sm:$0xff]  }
 0x19b   : > { %3381 = vmatprep.mubr.bf16.mxu0 %v5507_v10  ;;  %v5561_v10 = vld [vmem:[%s6113_s4 + $0x884] ss:$36 sps:$4 sm:$0xff]  }
 0x19c   : > { %v6404_v11 = vpop.f32.mrb[12].mxu1 }
 0x19d   : > { %v2655_v12 = vpop.f32.mrb[13].mxu1 }
 0x19e   : > { %v6407_v14 = vpop.f32.mrb[14].mxu1  ;;  %v5661_v12 = vld [vmem:[#allocation5 + $0x238] sm:$0xff]  }
 0x19f   : > { %v2658_v17 = vpop.f32.mrb[15].mxu1 }
 0x1a0   : > { %v5569_v17 = vld [vmem:[%s6113_s4 + $0x8cc] ss:$36 sps:$4 sm:$0xff]  }
 0x1a1   : > { %2868 = vmatmul.mubr.bf16.gmra.mrb[120].mxu1 %v5509_v13  ;;  %v5563_v13 = vld [vmem:[%s6113_s4 + $0x3f8] ss:$36 sps:$4 sm:$0xff]  }
 0x1a2   : > { %3382 = vmatmul.mubr.bf16.gmra.mrb[88].mxu0 %v5510_v15  ;;  %2875 = vmatprep.mubr.bf16.mxu1 %v5512_v16  ;;  %v5564_v15 = vld [vmem:[%s6113_s4 + $0x880] ss:$36 sps:$4 sm:$0xff]  }
 0x1a3   : > { %3389 = vmatprep.mubr.bf16.mxu0 %v5514_v18  ;;  %v5567_v16 = vld [vmem:[%s6113_s4 + $0x444] ss:$36 sps:$4 sm:$0xff]  }
 0x1a4   : > { %v6412_v19 = vpop.f32.mrb[16].mxu1  ;;  %v5571_v18 = vld [vmem:[%s6113_s4 + $0x440] ss:$36 sps:$4 sm:$0xff]  }
 0x1a5   : > { %v2663_v20 = vpop.f32.mrb[17].mxu1 }
 0x1a6   : > { %v6415_v22 = vpop.f32.mrb[18].mxu1  ;;  %v5572_v20 = vld [vmem:[%s6113_s4 + $0x8c8] ss:$36 sps:$4 sm:$0xff]  }
 0x1a7   : > { %v2666_v25 = vpop.f32.mrb[19].mxu1 }
 0x1a8   : > { %v5575_v25 = vld [vmem:[%s6113_s4 + $0x18] ss:$36 sps:$4 sm:$0xff]  }
 0x1a9   : > { %2876 = vmatmul.mubr.bf16.gmra.mrb[124].mxu1 %v5516_v21  ;;  %v5573_v21 = vld [vmem:[%s6113_s4 + $0x48c] ss:$36 sps:$4 sm:$0xff]  }
 0x1aa   : > { %3390 = vmatmul.mubr.bf16.gmra.mrb[92].mxu0 %v5517_v23  ;;  %2980 = vmatprep.mubr.bf16.mxu1 %v5520_v24  ;;  %v5577_v23 = vld [vmem:[%s6113_s4 + $0x1c] ss:$36 sps:$4 sm:$0xff]   ;;  %v5578_v24 = vld [vmem:[%s6113_s4 + $0x488] ss:$36 sps:$4 sm:$0xff]  }
 0x1ab   : > { %3397 = vmatprep.mubr.bf16.mxu0 %v5521_v26  ;;  %v5579_v26 = vld [vmem:[%s6113_s4 + $0x4d4] ss:$36 sps:$4 sm:$0xff]  }
 0x1ac   : > { %v6420_v27 = vpop.f32.mrb[20].mxu1 }
 0x1ad   : > { %v2671_v28 = vpop.f32.mrb[21].mxu1 }
 0x1ae   : > { %v6423_v30 = vpop.f32.mrb[22].mxu1  ;;  %v5581_v28 = vld [vmem:[%s6113_s4 + $0x64] ss:$36 sps:$4 sm:$0xff]  }
 0x1af   : > { %v2674_v32 = vpop.f32.mrb[23].mxu1 }
 0x1b0   : > { %v5586_v32 = vld [vmem:[%s6113_s4 + $0x51c] ss:$36 sps:$4 sm:$0xff]  }
 0x1b1   : > { %2981 = vmatmul.mubr.bf16.vlgmr.msra.gmra.mrb[32].mxu1 %v5518_v29  ;;  %v5583_v29 = vld [vmem:[%s6113_s4 + $0x4d0] ss:$36 sps:$4 sm:$0xff]  }
 0x1b2   : > { %3398 = vmatmul.mubr.bf16.gmra.mrb[96].mxu0 %v5523_v31  ;;  %4694 = vmatpush3.bf16.msra.mxu1 %v6334_v6  ;;  %v5585_v6 = vld [vmem:[#allocation5 + $0x218] sm:$0xff]   ;;  %v5584_v31 = vld [vmem:[%s6113_s4 + $0x60] ss:$36 sps:$4 sm:$0xff]  }
 0x1b3   : > { %2988 = vmatprep.mubr.bf16.mxu1 %v5526_v0  ;;  %3405 = vmatprep.mubr.bf16.mxu0 %v5528_v33  ;;  %v5588_v0 = vld [vmem:[%s6113_s4 + $0xac] ss:$36 sps:$4 sm:$0xff]   ;;  %v5590_v33 = vld [vmem:[%s6113_s4 + $0x518] ss:$36 sps:$4 sm:$0xff]  }
 0x1b4   : > { %v6429_v36 = vpop.f32.mrb[24].mxu1  ;;  %4695 = vmatprep.subr.bf16.mxu1 %v5545_v34 }
 0x1b5   : > { %v2679_v37 = vpop.f32.mrb[25].mxu1 }
 0x1b6   : > { %v6432_v39 = vpop.f32.mrb[26].mxu1  ;;  %4696 = vmatpush3.bf16.msra.mxu1 %v5545_v34  ;;  %v5591_v34 = vld [vmem:[%s6113_s4 + $0xa8] ss:$36 sps:$4 sm:$0xff]   ;;  %v5594_v37 = vld [vmem:[%s6113_s4 + $0xf4] ss:$36 sps:$4 sm:$0xff]  }
 0x1b7   : > { %v2682_v42 = vpop.f32.mrb[27].mxu1  ;;  %4697 = vmatprep.subr.bf16.mxu1 %v5566_v35 }
 0x1b8   : > { %v5600_v42 = vld [vmem:[%s6113_s4 + $0x13c] ss:$36 sps:$4 sm:$0xff]  }
 0x1b9   : > { %2989 = vmatmul.mubr.bf16.gmra.mrb[36].mxu1 %v5530_v38  ;;  %v5596_v38 = vld [vmem:[%s6113_s4 + $0x560] ss:$36 sps:$4 sm:$0xff]  }
 0x1ba   : > { %3406 = vmatmul.mubr.bf16.gmra.mrb[100].mxu0 %v5531_v40  ;;  %2996 = vmatprep.mubr.bf16.mxu1 %v5532_v41  ;;  %v5597_v40 = vld [vmem:[%s6113_s4 + $0xf0] ss:$36 sps:$4 sm:$0xff]  }
 0x1bb   : > { %3413 = vmatprep.mubr.bf16.mxu0 %v5534_v43  ;;  %4698 = vmatpush3.bf16.msra.mxu1 %v5566_v35  ;;  %v5592_v35 = vld [vmem:[%s6113_s4 + $0x564] ss:$36 sps:$4 sm:$0xff]   ;;  %v5598_v41 = vld [vmem:[%s6113_s4 + $0x5ac] ss:$36 sps:$4 sm:$0xff]  }
 0x1bc   : > { %v6437_v44 = vpop.f32.mrb[28].mxu1  ;;  %4699 = vmatprep.subr.bf16.mxu1 %v5585_v6  ;;  %v5602_v43 = vld [vmem:[%s6113_s4 + $0x5a8] ss:$36 sps:$4 sm:$0xff]  }
 0x1bd   : > { %v2687_v46 = vpop.f32.mrb[29].mxu1 }
 0x1be   : > { %v6440_v48 = vpop.f32.mrb[30].mxu1  ;;  %v5607_v46 = vld [vmem:[%s6113_s4 + $0x184] ss:$36 sps:$4 sm:$0xff]  }
 0x1bf   : > { %v2690_v53 = vpop.f32.mrb[31].mxu1  ;;  %4700 = vmatpush3.bf16.msra.mxu1 %v5585_v6  ;;  %v5603_v6 = vld [vmem:[%s6113_s4 + $0x138] ss:$36 sps:$4 sm:$0xff]  }
 0x1c0   : > { %4701 = vmatprep.subr.bf16.mxu1 %v5604_v45  ;;  %v5613_v53 = vld [vmem:[%s6113_s4 + $0x1cc] ss:$36 sps:$4 sm:$0xff]  }
 0x1c1   : > { %2997 = vmatmul.mubr.bf16.gmra.mrb[40].mxu1 %v5536_v47  ;;  %v5609_v47 = vld [vmem:[%s6113_s4 + $0x5f0] ss:$36 sps:$4 sm:$0xff]  }
 0x1c2   : > { %3414 = vmatmul.mubr.bf16.gmra.mrb[104].mxu0 %v5537_v50  ;;  %3004 = vmatprep.mubr.bf16.mxu1 %v5539_v51  ;;  %v5610_v50 = vld [vmem:[%s6113_s4 + $0x180] ss:$36 sps:$4 sm:$0xff]  }
 0x1c3   : > { %3421 = vmatprep.mubr.bf16.mxu0 %v5541_v54  ;;  %4702 = vmatpush3.bf16.msra.mxu1 %v5604_v45  ;;  %v5605_v45 = vld [vmem:[%s6113_s4 + $0x5f4] ss:$36 sps:$4 sm:$0xff]   ;;  %v5611_v51 = vld [vmem:[%s6113_s4 + $0x63c] ss:$36 sps:$4 sm:$0xff]  }
 0x1c4   : > { %4703 = vmatprep.subr.bf16.mxu1 %v5623_v55  ;;  %v5615_v54 = vld [vmem:[%s6113_s4 + $0x638] ss:$36 sps:$4 sm:$0xff]  }
 0x1c7   : > { %4704 = vmatpush3.bf16.msra.mxu1 %v5623_v55  ;;  %v5616_v55 = vld [vmem:[%s6113_s4 + $0x1c8] ss:$36 sps:$4 sm:$0xff]  }
 0x1c8   : > { %4705 = vmatprep.subr.bf16.mxu1 %v5642_v56 }
 0x1c9   : > { %3005 = vmatmul.mubr.bf16.gmra.mrb[44].mxu1 %v5543_v58  ;;  %v5619_v58 = vld [vmem:[%s6113_s4 + $0x214] ss:$36 sps:$4 sm:$0xff]  }
 0x1ca   : > { %3422 = vmatmul.mubr.bf16.gmra.mrb[108].mxu0 %v5544_v59  ;;  %3012 = vmatprep.mubr.bf16.mxu1 %v5546_v61  ;;  %v5621_v59 = vld [vmem:[%s6113_s4 + $0x680] ss:$36 sps:$4 sm:$0xff]   ;;  %v5622_v61 = vld [vmem:[%s6113_s4 + $0x210] ss:$36 sps:$4 sm:$0xff]  }
 0x1cb   : > { %3429 = vmatprep.mubr.bf16.mxu0 %v5548_v62  ;;  %4706 = vmatpush3.bf16.msra.mxu1 %v5642_v56  ;;  %v5617_v56 = vld [vmem:[%s6113_s4 + $0x684] ss:$36 sps:$4 sm:$0xff]   ;;  %v5624_v62 = vld [vmem:[%s6113_s4 + $0x6cc] ss:$36 sps:$4 sm:$0xff]  }
 0x1cc   : > { %4707 = vmatprep.subr.bf16.mxu1 %v5661_v12 }
 0x1cf   : > { %4708 = vmatpush3.bf16.msra.mxu1 %v5661_v12  ;;  %v5638_v12 = vld [vmem:[%s6113_s4 + $0x2ec] ss:$36 sps:$4 sm:$0xff]  }
 0x1d1   : > { %3013 = vmatmul.mubr.bf16.gmra.mrb[48].mxu1 %v5550_v63  ;;  %v5626_v63 = vld [vmem:[%s6113_s4 + $0x25c] ss:$36 sps:$4 sm:$0xff]  }
 0x1d2   : > { %3430 = vmatmul.mubr.bf16.gmra.mrb[112].mxu0 %v5551_v1  ;;  %3020 = vmatprep.mubr.bf16.mxu1 %v5553_v3  ;;  %v5628_v1 = vld [vmem:[%s6113_s4 + $0x6c8] ss:$36 sps:$4 sm:$0xff]   ;;  %v5629_v3 = vld [vmem:[%s6113_s4 + $0x258] ss:$36 sps:$4 sm:$0xff]  }
 0x1d3   : > { %3437 = vmatprep.mubr.bf16.mxu0 %v5555_v4  ;;  %v5630_v4 = vld [vmem:[%s6113_s4 + $0x714] ss:$36 sps:$4 sm:$0xff]  }
 0x1d9   : > { %3021 = vmatmul.mubr.bf16.gmra.mrb[52].mxu1 %v5557_v7  ;;  %v5632_v7 = vld [vmem:[%s6113_s4 + $0x2a4] ss:$36 sps:$4 sm:$0xff]  }
 0x1da   : > { %3438 = vmatmul.mubr.bf16.gmra.mrb[116].mxu0 %v5558_v8  ;;  %3028 = vmatprep.mubr.bf16.mxu1 %v5559_v9  ;;  %v5634_v8 = vld [vmem:[%s6113_s4 + $0x710] ss:$36 sps:$4 sm:$0xff]   ;;  %v5635_v9 = vld [vmem:[%s6113_s4 + $0x2a0] ss:$36 sps:$4 sm:$0xff]  }
 0x1db   : > { %3445 = vmatprep.mubr.bf16.mxu0 %v5561_v10  ;;  %v5636_v10 = vld [vmem:[%s6113_s4 + $0x75c] ss:$36 sps:$4 sm:$0xff]  }
 0x1e1   : > { %3029 = vmatmul.mubr.bf16.gmra.mrb[56].mxu1 %v5563_v13  ;;  %v5640_v13 = vld [vmem:[%s6113_s4 + $0x758] ss:$36 sps:$4 sm:$0xff]  }
 0x1e2   : > { %3446 = vmatmul.mubr.bf16.gmra.mrb[120].mxu0 %v5564_v15  ;;  %3036 = vmatprep.mubr.bf16.mxu1 %v5567_v16  ;;  %v5641_v15 = vld [vmem:[%s6113_s4 + $0x2e8] ss:$36 sps:$4 sm:$0xff]  }
 0x1e3   : > { %3453 = vmatprep.mubr.bf16.mxu0 %v5569_v17  ;;  %v5643_v16 = vld [vmem:[%s6113_s4 + $0x7a4] ss:$36 sps:$4 sm:$0xff]   ;;  %v5645_v17 = vld [vmem:[%s6113_s4 + $0x334] ss:$36 sps:$4 sm:$0xff]  }
 0x1e9   : > { %3037 = vmatmul.mubr.bf16.gmra.mrb[60].mxu1 %v5571_v18  ;;  %v5647_v18 = vld [vmem:[%s6113_s4 + $0x7a0] ss:$36 sps:$4 sm:$0xff]  }
 0x1ea   : > { %3454 = vmatmul.mubr.bf16.gmra.mrb[124].mxu0 %v5572_v20  ;;  %3044 = vmatprep.mubr.bf16.mxu1 %v5573_v21  ;;  %v5648_v20 = vld [vmem:[%s6113_s4 + $0x330] ss:$36 sps:$4 sm:$0xff]  }
 0x1eb   : > { %3494 = vmatprep.mubr.bf16.mxu0 %v5577_v23  ;;  %v5649_v21 = vld [vmem:[%s6113_s4 + $0x7ec] ss:$36 sps:$4 sm:$0xff]   ;;  %v5651_v23 = vld [vmem:[%s6113_s4 + $0x37c] ss:$36 sps:$4 sm:$0xff]  }
 0x1f1   : > { %3045 = vmatmul.mubr.bf16.gmra.mrb[64].mxu1 %v5578_v24  ;;  %v5653_v24 = vld [vmem:[%s6113_s4 + $0x7e8] ss:$36 sps:$4 sm:$0xff]  }
 0x1f2   : > { %3495 = vmatmul.mubr.bf16.vlgmr.msra.gmra.mrb[0].mxu0 %v5575_v25  ;;  %3052 = vmatprep.mubr.bf16.mxu1 %v5579_v26  ;;  %v5654_v25 = vld [vmem:[%s6113_s4 + $0x378] ss:$36 sps:$4 sm:$0xff]  }
 0x1f3   : > { %3502 = vmatprep.mubr.bf16.mxu0 %v5581_v28  ;;  %v5655_v26 = vld [vmem:[%s6113_s4 + $0x834] ss:$36 sps:$4 sm:$0xff]   ;;  %v5657_v28 = vld [vmem:[%s6113_s4 + $0x3c4] ss:$36 sps:$4 sm:$0xff]  }
 0x1f9   : > { %3053 = vmatmul.mubr.bf16.gmra.mrb[68].mxu1 %v5583_v29  ;;  %v5659_v29 = vld [vmem:[%s6113_s4 + $0x830] ss:$36 sps:$4 sm:$0xff]  }
 0x1fa   : > { %3503 = vmatmul.mubr.bf16.gmra.mrb[4].mxu0 %v5584_v31  ;;  %3060 = vmatprep.mubr.bf16.mxu1 %v5586_v32  ;;  %v5660_v31 = vld [vmem:[%s6113_s4 + $0x3c0] ss:$36 sps:$4 sm:$0xff]  }
 0x1fb   : > { %3510 = vmatprep.mubr.bf16.mxu0 %v5588_v0  ;;  %v5662_v32 = vld [vmem:[%s6113_s4 + $0x87c] ss:$36 sps:$4 sm:$0xff]   ;;  %v5664_v0 = vld [vmem:[%s6113_s4 + $0x40c] ss:$36 sps:$4 sm:$0xff]  }
 0x201   : > { %3061 = vmatmul.mubr.bf16.gmra.mrb[72].mxu1 %v5590_v33  ;;  %v5666_v33 = vld [vmem:[%s6113_s4 + $0x878] ss:$36 sps:$4 sm:$0xff]  }
 0x202   : > { %3511 = vmatmul.mubr.bf16.gmra.mrb[8].mxu0 %v5591_v34  ;;  %3068 = vmatprep.mubr.bf16.mxu1 %v5592_v35  ;;  %v5667_v34 = vld [vmem:[%s6113_s4 + $0x408] ss:$36 sps:$4 sm:$0xff]  }
 0x203   : > { %3518 = vmatprep.mubr.bf16.mxu0 %v5594_v37  ;;  %v5668_v35 = vld [vmem:[%s6113_s4 + $0x8c4] ss:$36 sps:$4 sm:$0xff]   ;;  %v5670_v37 = vld [vmem:[%s6113_s4 + $0x454] ss:$36 sps:$4 sm:$0xff]  }
 0x209   : > { %3069 = vmatmul.mubr.bf16.gmra.mrb[76].mxu1 %v5596_v38  ;;  %v5672_v38 = vld [vmem:[%s6113_s4 + $0x8c0] ss:$36 sps:$4 sm:$0xff]  }
 0x20a   : > { %3519 = vmatmul.mubr.bf16.gmra.mrb[12].mxu0 %v5597_v40  ;;  %3076 = vmatprep.mubr.bf16.mxu1 %v5598_v41  ;;  %v5673_v40 = vld [vmem:[%s6113_s4 + $0x450] ss:$36 sps:$4 sm:$0xff]   ;;  %v5676_v41 = vld [vmem:[%s6113_s4 + $0x20] ss:$36 sps:$4 sm:$0xff]  }
 0x20b   : > { %3526 = vmatprep.mubr.bf16.mxu0 %v5600_v42  ;;  %v5674_v42 = vld [vmem:[%s6113_s4 + $0x49c] ss:$36 sps:$4 sm:$0xff]  }
 0x211   : > { %3077 = vmatmul.mubr.bf16.gmra.mrb[80].mxu1 %v5602_v43  ;;  %v5678_v43 = vld [vmem:[%s6113_s4 + $0x68] ss:$36 sps:$4 sm:$0xff]  }
 0x212   : > { %3527 = vmatmul.mubr.bf16.gmra.mrb[16].mxu0 %v5603_v6  ;;  %3084 = vmatprep.mubr.bf16.mxu1 %v5605_v45  ;;  %v5677_v6 = vld [vmem:[%s6113_s4 + $0x498] ss:$36 sps:$4 sm:$0xff]   ;;  %v5681_v45 = vld [vmem:[%s6113_s4 + $0xb0] ss:$36 sps:$4 sm:$0xff]  }
 0x213   : > { %3534 = vmatprep.mubr.bf16.mxu0 %v5607_v46  ;;  %v5679_v46 = vld [vmem:[%s6113_s4 + $0x4e4] ss:$36 sps:$4 sm:$0xff]  }
 0x219   : > { %3085 = vmatmul.mubr.bf16.gmra.mrb[84].mxu1 %v5609_v47  ;;  %v5683_v47 = vld [vmem:[%s6113_s4 + $0xf8] ss:$36 sps:$4 sm:$0xff]  }
 0x21a   : > { %3535 = vmatmul.mubr.bf16.gmra.mrb[20].mxu0 %v5610_v50  ;;  %3092 = vmatprep.mubr.bf16.mxu1 %v5611_v51  ;;  %v5682_v50 = vld [vmem:[%s6113_s4 + $0x4e0] ss:$36 sps:$4 sm:$0xff]  }
 0x21b   : > { %3542 = vmatprep.mubr.bf16.mxu0 %v5613_v53  ;;  %v5686_v51 = vld [vmem:[%s6113_s4 + $0x140] ss:$36 sps:$4 sm:$0xff]   ;;  %v5684_v53 = vld [vmem:[%s6113_s4 + $0x52c] ss:$36 sps:$4 sm:$0xff]  }
 0x221   : > { %3093 = vmatmul.mubr.bf16.gmra.mrb[88].mxu1 %v5615_v54  ;;  %v5688_v54 = vld [vmem:[%s6113_s4 + $0x188] ss:$36 sps:$4 sm:$0xff]  }
 0x222   : > { %3543 = vmatmul.mubr.bf16.gmra.mrb[24].mxu0 %v5616_v55  ;;  %3100 = vmatprep.mubr.bf16.mxu1 %v5617_v56  ;;  %v5687_v55 = vld [vmem:[%s6113_s4 + $0x528] ss:$36 sps:$4 sm:$0xff]   ;;  %v5691_v56 = vld [vmem:[%s6113_s4 + $0x1d0] ss:$36 sps:$4 sm:$0xff]  }
 0x223   : > { %3550 = vmatprep.mubr.bf16.mxu0 %v5619_v58  ;;  %v5689_v58 = vld [vmem:[%s6113_s4 + $0x574] ss:$36 sps:$4 sm:$0xff]  }
 0x229   : > { %3101 = vmatmul.mubr.bf16.gmra.mrb[92].mxu1 %v5621_v59 }
 0x22a   : > { %3551 = vmatmul.mubr.bf16.gmra.mrb[28].mxu0 %v5622_v61  ;;  %3108 = vmatprep.mubr.bf16.mxu1 %v5624_v62  ;;  %v5693_v62 = vld [vmem:[%s6113_s4 + $0x218] ss:$36 sps:$4 sm:$0xff]  }
 0x22b   : > { %3558 = vmatprep.mubr.bf16.mxu0 %v5626_v63 }
 0x231   : > { %3109 = vmatmul.mubr.bf16.gmra.mrb[96].mxu1 %v5628_v1  ;;  %v5692_v1 = vld [vmem:[%s6113_s4 + $0x570] ss:$36 sps:$4 sm:$0xff]  }
 0x232   : > { %3559 = vmatmul.mubr.bf16.gmra.mrb[32].mxu0 %v5629_v3  ;;  %3116 = vmatprep.mubr.bf16.mxu1 %v5630_v4  ;;  %v5696_v3 = vld [vmem:[%s6113_s4 + $0x260] ss:$36 sps:$4 sm:$0xff]  }
 0x233   : > { %3566 = vmatprep.mubr.bf16.mxu0 %v5632_v7  ;;  %v5694_v7 = vld [vmem:[%s6113_s4 + $0x5bc] ss:$36 sps:$4 sm:$0xff]  }
 0x239   : > { %3117 = vmatmul.mubr.bf16.gmra.mrb[100].mxu1 %v5634_v8 }
 0x23a   : > { %3567 = vmatmul.mubr.bf16.gmra.mrb[36].mxu0 %v5635_v9  ;;  %3124 = vmatprep.mubr.bf16.mxu1 %v5636_v10  ;;  %v5698_v10 = vld [vmem:[%s6113_s4 + $0x2a8] ss:$36 sps:$4 sm:$0xff]  }
 0x23b   : > { %3574 = vmatprep.mubr.bf16.mxu0 %v5638_v12 }
 0x241   : > { %3125 = vmatmul.mubr.bf16.gmra.mrb[104].mxu1 %v5640_v13  ;;  %v5697_v13 = vld [vmem:[%s6113_s4 + $0x5b8] ss:$36 sps:$4 sm:$0xff]  }
 0x242   : > { %3575 = vmatmul.mubr.bf16.gmra.mrb[40].mxu0 %v5641_v15  ;;  %3132 = vmatprep.mubr.bf16.mxu1 %v5643_v16  ;;  %v5701_v15 = vld [vmem:[%s6113_s4 + $0x2f0] ss:$36 sps:$4 sm:$0xff]  }
 0x243   : > { %3582 = vmatprep.mubr.bf16.mxu0 %v5645_v17  ;;  %v5699_v17 = vld [vmem:[%s6113_s4 + $0x604] ss:$36 sps:$4 sm:$0xff]  }
 0x249   : > { %3133 = vmatmul.mubr.bf16.gmra.mrb[108].mxu1 %v5647_v18 }
 0x24a   : > { %3583 = vmatmul.mubr.bf16.gmra.mrb[44].mxu0 %v5648_v20  ;;  %3140 = vmatprep.mubr.bf16.mxu1 %v5649_v21  ;;  %v5703_v21 = vld [vmem:[%s6113_s4 + $0x338] ss:$36 sps:$4 sm:$0xff]  }
 0x24b   : > { %3590 = vmatprep.mubr.bf16.mxu0 %v5651_v23 }
 0x251   : > { %3141 = vmatmul.mubr.bf16.gmra.mrb[112].mxu1 %v5653_v24  ;;  %v5702_v24 = vld [vmem:[%s6113_s4 + $0x600] ss:$36 sps:$4 sm:$0xff]  }
 0x252   : > { %3591 = vmatmul.mubr.bf16.gmra.mrb[48].mxu0 %v5654_v25  ;;  %3148 = vmatprep.mubr.bf16.mxu1 %v5655_v26  ;;  %v5706_v25 = vld [vmem:[%s6113_s4 + $0x380] ss:$36 sps:$4 sm:$0xff]  }
 0x253   : > { %3598 = vmatprep.mubr.bf16.mxu0 %v5657_v28  ;;  %v5704_v28 = vld [vmem:[%s6113_s4 + $0x64c] ss:$36 sps:$4 sm:$0xff]  }
 0x259   : > { %3149 = vmatmul.mubr.bf16.gmra.mrb[116].mxu1 %v5659_v29 }
 0x25a   : > { %3599 = vmatmul.mubr.bf16.gmra.mrb[52].mxu0 %v5660_v31  ;;  %3156 = vmatprep.mubr.bf16.mxu1 %v5662_v32  ;;  %v5708_v32 = vld [vmem:[%s6113_s4 + $0x3c8] ss:$36 sps:$4 sm:$0xff]  }
 0x25b   : > { %3606 = vmatprep.mubr.bf16.mxu0 %v5664_v0 }
 0x261   : > { %3157 = vmatmul.mubr.bf16.gmra.mrb[120].mxu1 %v5666_v33  ;;  %v5707_v33 = vld [vmem:[%s6113_s4 + $0x648] ss:$36 sps:$4 sm:$0xff]  }
 0x262   : > { %3607 = vmatmul.mubr.bf16.gmra.mrb[56].mxu0 %v5667_v34  ;;  %3164 = vmatprep.mubr.bf16.mxu1 %v5668_v35  ;;  %v5711_v34 = vld [vmem:[%s6113_s4 + $0x410] ss:$36 sps:$4 sm:$0xff]  }
 0x263   : > { %3614 = vmatprep.mubr.bf16.mxu0 %v5670_v37  ;;  %v5709_v37 = vld [vmem:[%s6113_s4 + $0x694] ss:$36 sps:$4 sm:$0xff]  }
 0x269   : > { %3165 = vmatmul.mubr.bf16.gmra.mrb[124].mxu1 %v5672_v38 }
 0x26a   : > { %3615 = vmatmul.mubr.bf16.gmra.mrb[60].mxu0 %v5673_v40  ;;  %4709 = vmatprep.mubr.bf16.mxu1 %v5676_v41  ;;  %v5713_v41 = vld [vmem:[%s6113_s4 + $0x458] ss:$36 sps:$4 sm:$0xff]  }
 0x26b   : > { %3622 = vmatprep.mubr.bf16.mxu0 %v5674_v42 }
 0x271   : > { %4710 = vmatmul.mubr.bf16.vlgmr.msra.gmra.mrb[128].mxu1 %v5678_v43  ;;  %v5712_v43 = vld [vmem:[%s6113_s4 + $0x690] ss:$36 sps:$4 sm:$0xff]  }
 0x272   : > { %3623 = vmatmul.mubr.bf16.gmra.mrb[64].mxu0 %v5677_v6  ;;  %4713 = vmatprep.mubr.bf16.mxu1 %v5681_v45  ;;  %v5716_v6 = vld [vmem:[%s6113_s4 + $0x4a0] ss:$36 sps:$4 sm:$0xff]  }
 0x273   : > { %3630 = vmatprep.mubr.bf16.mxu0 %v5679_v46  ;;  %v5714_v46 = vld [vmem:[%s6113_s4 + $0x6dc] ss:$36 sps:$4 sm:$0xff]  }
 0x279   : > { %4714 = vmatmul.mubr.bf16.gmra.mrb[132].mxu1 %v5683_v47 }
 0x27a   : > { %3631 = vmatmul.mubr.bf16.gmra.mrb[68].mxu0 %v5682_v50  ;;  %4717 = vmatprep.mubr.bf16.mxu1 %v5686_v51  ;;  %v5718_v51 = vld [vmem:[%s6113_s4 + $0x4e8] ss:$36 sps:$4 sm:$0xff]  }
 0x27b   : > { %3638 = vmatprep.mubr.bf16.mxu0 %v5684_v53 }
 0x281   : > { %4718 = vmatmul.mubr.bf16.gmra.mrb[136].mxu1 %v5688_v54  ;;  %v5717_v54 = vld [vmem:[%s6113_s4 + $0x6d8] ss:$36 sps:$4 sm:$0xff]  }
 0x282   : > { %3639 = vmatmul.mubr.bf16.gmra.mrb[72].mxu0 %v5687_v55  ;;  %4721 = vmatprep.mubr.bf16.mxu1 %v5691_v56  ;;  %v5721_v55 = vld [vmem:[%s6113_s4 + $0x530] ss:$36 sps:$4 sm:$0xff]  }
 0x283   : > { %3646 = vmatprep.mubr.bf16.mxu0 %v5689_v58  ;;  %v5719_v58 = vld [vmem:[%s6113_s4 + $0x724] ss:$36 sps:$4 sm:$0xff]  }
 0x284   : > { %v6541_v59 = vpop.f32.mrb[32].mxu1 }
 0x285   : > { %v2984_v61 = vpop.f32.mrb[33].mxu1 }
 0x286   : > { %v6544_v63 = vpop.f32.mrb[34].mxu1 }
 0x287   : > { %v2987_v4 = vpop.f32.mrb[35].mxu1 }
 0x288   : > { %v5722_v4 = vld [vmem:[%s6113_s4 + $0x720] ss:$36 sps:$4 sm:$0xff]  }
 0x289   : > { %4722 = vmatmul.mubr.bf16.gmra.mrb[140].mxu1 %v5693_v62 }
 0x28a   : > { %3647 = vmatmul.mubr.bf16.gmra.mrb[76].mxu0 %v5692_v1  ;;  %4725 = vmatprep.mubr.bf16.mxu1 %v5696_v3  ;;  %v5723_v1 = vld [vmem:[%s6113_s4 + $0x578] ss:$36 sps:$4 sm:$0xff]  }
 0x28b   : > { %3654 = vmatprep.mubr.bf16.mxu0 %v5694_v7  ;;  %v5726_v7 = vld [vmem:[%s6113_s4 + $0x5c0] ss:$36 sps:$4 sm:$0xff]  }
 0x28c   : > { %v6549_v8 = vpop.f32.mrb[36].mxu1 }
 0x28d   : > { %v2992_v9 = vpop.f32.mrb[37].mxu1 }
 0x28e   : > { %v6552_v12 = vpop.f32.mrb[38].mxu1 }
 0x28f   : > { %v2995_v16 = vpop.f32.mrb[39].mxu1 }
 0x290   : > { %v5728_v16 = vld [vmem:[%s6113_s4 + $0x608] ss:$36 sps:$4 sm:$0xff]  }
 0x291   : > { %4726 = vmatmul.mubr.bf16.gmra.mrb[144].mxu1 %v5698_v10  ;;  %v5724_v10 = vld [vmem:[%s6113_s4 + $0x76c] ss:$36 sps:$4 sm:$0xff]  }
 0x292   : > { %3655 = vmatmul.mubr.bf16.gmra.mrb[80].mxu0 %v5697_v13  ;;  %4729 = vmatprep.mubr.bf16.mxu1 %v5701_v15 }
 0x293   : > { %3662 = vmatprep.mubr.bf16.mxu0 %v5699_v17 }
 0x294   : > { %v6557_v18 = vpop.f32.mrb[40].mxu1 }
 0x295   : > { %v3000_v20 = vpop.f32.mrb[41].mxu1 }
 0x296   : > { %v6560_v23 = vpop.f32.mrb[42].mxu1  ;;  %v5727_v20 = vld [vmem:[%s6113_s4 + $0x768] ss:$36 sps:$4 sm:$0xff]  }
 0x297   : > { %v3003_v26 = vpop.f32.mrb[43].mxu1 }
 0x298   : > { %v6605_v26 = vld [vmem:[#allocation7] ss:$0 sm:$0xff] }
 0x299   : > { %4730 = vmatmul.mubr.bf16.gmra.mrb[148].mxu1 %v5703_v21  ;;  %v5731_v21 = vld [vmem:[%s6113_s4 + $0x650] ss:$36 sps:$4 sm:$0xff]  }
 0x29a   : > { %3663 = vmatmul.mubr.bf16.gmra.mrb[84].mxu0 %v5702_v24  ;;  %4733 = vmatprep.mubr.bf16.mxu1 %v5706_v25  ;;  %v5729_v25 = vld [vmem:[%s6113_s4 + $0x7b4] ss:$36 sps:$4 sm:$0xff]  }
 0x29b   : > { %3670 = vmatprep.mubr.bf16.mxu0 %v5704_v28  ;;  %v2630_v28 = vadd.f32 %v6605_v26, %v6380_v49 }
 0x29c   : > { %v6565_v29 = vpop.f32.mrb[44].mxu1 }
 0x29d   : > { %v3008_v31 = vpop.f32.mrb[45].mxu1 }
 0x29e   : > { %v6568_v0 = vpop.f32.mrb[46].mxu1 }
 0x29f   : > { %v3011_v35 = vpop.f32.mrb[47].mxu1 }
 0x2a0   : > { %v2633_v35 = vadd.f32 %v6605_v26, %v6383_v52  ;;  %v2638_v52 = vadd.f32 %v6605_v26, %v6388_v57 }
 0x2a1   : > { %4734 = vmatmul.mubr.bf16.gmra.mrb[152].mxu1 %v5708_v32 }
 0x2a2   : > { %3671 = vmatmul.mubr.bf16.gmra.mrb[88].mxu0 %v5707_v33  ;;  %4737 = vmatprep.mubr.bf16.mxu1 %v5711_v34  ;;  %v5733_v34 = vld [vmem:[%s6113_s4 + $0x698] ss:$36 sps:$4 sm:$0xff]  }
 0x2a3   : > { %3678 = vmatprep.mubr.bf16.mxu0 %v5709_v37 }
 0x2a4   : > { %v6573_v38 = vpop.f32.mrb[48].mxu1 }
 0x2a5   : > { %v3016_v40 = vpop.f32.mrb[49].mxu1 }
 0x2a6   : > { %v6576_v42 = vpop.f32.mrb[50].mxu1 }
 0x2a7   : > { %v3019_v45 = vpop.f32.mrb[51].mxu1 }
 0x2a9   : > { %4738 = vmatmul.mubr.bf16.gmra.mrb[156].mxu1 %v5713_v41 }
 0x2aa   : > { %3679 = vmatmul.mubr.bf16.gmra.mrb[92].mxu0 %v5712_v43  ;;  %4741 = vmatprep.mubr.bf16.mxu1 %v5716_v6  ;;  %v5732_v43 = vld [vmem:[%s6113_s4 + $0x7b0] ss:$36 sps:$4 sm:$0xff]   ;;  %v5736_v6 = vld [vmem:[%s6113_s4 + $0x6e0] ss:$36 sps:$4 sm:$0xff]  }
 0x2ab   : > { %3686 = vmatprep.mubr.bf16.mxu0 %v5714_v46 }
 0x2ac   : > { %v6581_v47 = vpop.f32.mrb[52].mxu1 }
 0x2ad   : > { %v3024_v50 = vpop.f32.mrb[53].mxu1 }
 0x2ae   : > { %v6584_v53 = vpop.f32.mrb[54].mxu1  ;;  %v5734_v50 = vld [vmem:[%s6113_s4 + $0x7fc] ss:$36 sps:$4 sm:$0xff]  }
 0x2af   : > { %v3027_v56 = vpop.f32.mrb[55].mxu1 }
 0x2b1   : > { %4742 = vmatmul.mubr.bf16.gmra.mrb[160].mxu1 %v5718_v51 }
 0x2b2   : > { %3687 = vmatmul.mubr.bf16.gmra.mrb[96].mxu0 %v5717_v54  ;;  %4745 = vmatprep.mubr.bf16.mxu1 %v5721_v55 }
 0x2b3   : > { %3694 = vmatprep.mubr.bf16.mxu0 %v5719_v58  ;;  %v5738_v58 = vld [vmem:[%s6113_s4 + $0x728] ss:$36 sps:$4 sm:$0xff]  }
 0x2b4   : > { %v6589_v61 = vpop.f32.mrb[56].mxu1 }
 0x2b5   : > { %v3032_v62 = vpop.f32.mrb[57].mxu1 }
 0x2b6   : > { %v6592_v3 = vpop.f32.mrb[58].mxu1  ;;  %v2641_v62 = vadd.f32 %v6605_v26, %v6391_v60  ;;  %v2646_v60 = vadd.f32 %v6605_v26, %v6396_v2 }
 0x2b7   : > { %v3035_v9 = vpop.f32.mrb[59].mxu1 }
 0x2b8   : > { %v5737_v9 = vld [vmem:[%s6113_s4 + $0x7f8] ss:$36 sps:$4 sm:$0xff]  }
 0x2b9   : > { %4746 = vmatmul.mubr.bf16.gmra.mrb[164].mxu1 %v5723_v1 }
 0x2ba   : > { %3695 = vmatmul.mubr.bf16.gmra.mrb[100].mxu0 %v5722_v4  ;;  %4749 = vmatprep.mubr.bf16.mxu1 %v5726_v7 }
 0x2bb   : > { %3702 = vmatprep.mubr.bf16.mxu0 %v5724_v10  ;;  %v5741_v10 = vld [vmem:[%s6113_s4 + $0x770] ss:$36 sps:$4 sm:$0xff]  }
 0x2bc   : > { %v6597_v13 = vpop.f32.mrb[60].mxu1 }
 0x2bd   : > { %v3040_v15 = vpop.f32.mrb[61].mxu1 }
 0x2be   : > { %v6600_v17 = vpop.f32.mrb[62].mxu1 }
 0x2bf   : > { %v3043_v24 = vpop.f32.mrb[63].mxu1 }
 0x2c1   : > { %4750 = vmatmul.mubr.bf16.gmra.mrb[168].mxu1 %v5728_v16 }
 0x2c2   : > { %3703 = vmatmul.mubr.bf16.gmra.mrb[104].mxu0 %v5727_v20  ;;  %4753 = vmatprep.mubr.bf16.mxu1 %v5731_v21  ;;  %v5739_v20 = vld [vmem:[%s6113_s4 + $0x844] ss:$36 sps:$4 sm:$0xff]  }
 0x2c3   : > { %3710 = vmatprep.mubr.bf16.mxu0 %v5729_v25 }
 0x2c4   : > { %v6609_v31 = vpop.f32.mrb[64].mxu1 }
 0x2c5   : > { %v3496_v32 = vpop.f32.mrb[0].mxu0  ;;  %v3048_v33 = vpop.f32.mrb[65].mxu1 }
 0x2c6   : > { %v6614_v37 = vadd.f32 %v3496_v32, %v2630_v28  ;;  %v3498_v40 = vpop.f32.mrb[1].mxu0  ;;  %v6616_v41 = vpop.f32.mrb[66].mxu1  ;;  %v5743_v32 = vld [vmem:[%s6113_s4 + $0x7b8] ss:$36 sps:$4 sm:$0xff]   ;;  %v2649_v33 = vadd.f32 %v6605_v26, %v6399_v5  ;;  %v2654_v5 = vadd.f32 %v6605_v26, %v6404_v11 }
 0x2c7   : > { %v3499_v45 = vpop.f32.mrb[2].mxu0  ;;  %v3051_v46 = vpop.f32.mrb[67].mxu1 }
 0x2c8   : > { %v6621_v49 = vadd.f32 %v3499_v45, %v2633_v35  ;;  %v3501_v51 = vpop.f32.mrb[3].mxu0 }
 0x2c9   : > { %4754 = vmatmul.mubr.bf16.gmra.mrb[172].mxu1 %v5733_v34 }
 0x2ca   : > { %3711 = vmatmul.mubr.bf16.gmra.mrb[108].mxu0 %v5732_v43  ;;  %4757 = vmatprep.mubr.bf16.mxu1 %v5736_v6  ;;  %v5742_v43 = vld [vmem:[%s6113_s4 + $0x840] ss:$36 sps:$4 sm:$0xff]  }
 0x2cb   : > { %3718 = vmatprep.mubr.bf16.mxu0 %v5734_v50  ;;  %v5746_v6 = vld [vmem:[%s6113_s4 + $0x800] ss:$36 sps:$4 sm:$0xff]   ;;  %v5744_v50 = vld [vmem:[%s6113_s4 + $0x88c] ss:$36 sps:$4 sm:$0xff]  }
 0x2cc   : > { %v6625_v54 = vpop.f32.mrb[68].mxu1 }
 0x2cd   : > { %v3504_v55 = vpop.f32.mrb[4].mxu0  ;;  %v3056_v56 = vpop.f32.mrb[69].mxu1 }
 0x2ce   : > { %v6630_v1 = vadd.f32 %v3504_v55, %v2638_v52  ;;  %v3506_v4 = vpop.f32.mrb[5].mxu0  ;;  %v6632_v7 = vpop.f32.mrb[70].mxu1 }
 0x2cf   : > { %v3507_v15 = vpop.f32.mrb[6].mxu0  ;;  %v3059_v16 = vpop.f32.mrb[71].mxu1 }
 0x2d0   : > { %v6637_v57 = vadd.f32 %v3507_v15, %v2641_v62  ;;  %v3509_v21 = vpop.f32.mrb[7].mxu0  ;;  %v2657_v62 = vadd.f32 %v6605_v26, %v6407_v14  ;;  %v5747_v15 = vld [vmem:[%s6113_s4 + $0x888] ss:$36 sps:$4 sm:$0xff]   ;;  %v5751_v16 = vld [vmem:[%s6113_s4 + $0x890] ss:$36 sps:$4 sm:$0xff]   ;;  %v2662_v14 = vadd.f32 %v6605_v26, %v6412_v19  ;;  %v2670_v19 = vadd.f32 %v6605_v26, %v6420_v27 }
 0x2d1   : > { %4758 = vmatmul.mubr.bf16.gmra.mrb[176].mxu1 %v5738_v58  ;;  %v5748_v58 = vld [vmem:[%s6113_s4 + $0x848] ss:$36 sps:$4 sm:$0xff]   ;;  %v2678_v27 = vadd.f32 %v6605_v26, %v6429_v36  ;;  %v2686_v36 = vadd.f32 %v6605_v26, %v6437_v44  ;;  %v4837_v44 = vadd.f32 %v6605_v26, %v6541_v59  ;;  %v4841_v59 = vadd.f32 %v6605_v26, %v6549_v8 }
 0x2d2   : > { %3719 = vmatmul.mubr.bf16.gmra.mrb[112].mxu0 %v5737_v9  ;;  %4761 = vmatprep.mubr.bf16.mxu1 %v5741_v10  ;;  %v4845_v8 = vadd.f32 %v6605_v26, %v6557_v18  ;;  %v4849_v18 = vadd.f32 %v6605_v26, %v6565_v29  ;;  %v4853_v29 = vadd.f32 %v6605_v26, %v6573_v38 }
 0x2d3   : > { %3726 = vmatprep.mubr.bf16.mxu0 %v5739_v20  ;;  %v4857_v38 = vadd.f32 %v6605_v26, %v6581_v47  ;;  %v4861_v47 = vadd.f32 %v6605_v26, %v6589_v61  ;;  %v4865_v61 = vadd.f32 %v6605_v26, %v6597_v13  ;;  %v4869_v13 = vadd.f32 %v6605_v26, %v6609_v31 }
 0x2d4   : > { %v6641_v24 = vpop.f32.mrb[72].mxu1 }
 0x2d5   : > { %v3512_v25 = vpop.f32.mrb[8].mxu0  ;;  %v3064_v28 = vpop.f32.mrb[73].mxu1 }
 0x2d6   : > { %v6646_v34 = vadd.f32 %v3512_v25, %v2646_v60  ;;  %v3514_v35 = vpop.f32.mrb[9].mxu0  ;;  %v6648_v40 = vpop.f32.mrb[74].mxu1  ;;  %v5749_v60 = vld [vmem:[%s6113_s4 + $0x8d4] ss:$36 sps:$4 sm:$0xff]  }
 0x2d7   : > { %v3515_v45 = vpop.f32.mrb[10].mxu0  ;;  %v3067_v46 = vpop.f32.mrb[75].mxu1  ;;  %v5753_v35 = vld [vmem:[%s6113_s4 + $0x8d8] ss:$36 sps:$4 sm:$0xff]  }
 0x2d8   : > { %v6653_v2 = vadd.f32 %v3515_v45, %v2649_v33  ;;  %v3517_v51 = vpop.f32.mrb[11].mxu0 }
 0x2d9   : > { %4762 = vmatmul.mubr.bf16.gmra.mrb[180].mxu1 %v5743_v32 }
 0x2da   : > { %3727 = vmatmul.mubr.bf16.gmra.mrb[116].mxu0 %v5742_v43  ;;  %4765 = vmatprep.mubr.bf16.mxu1 %v5746_v6  ;;  %v2665_v43 = vadd.f32 %v6605_v26, %v6415_v22 }
 0x2db   : > { %3734 = vmatprep.mubr.bf16.mxu0 %v5744_v50  ;;  %v5752_v50 = vld [vmem:[%s6113_s4 + $0x8d0] ss:$36 sps:$4 sm:$0xff]  }
 0x2dc   : > { %v6657_v52 = vpop.f32.mrb[76].mxu1 }
 0x2dd   : > { %v3520_v55 = vpop.f32.mrb[12].mxu0  ;;  %v3072_v56 = vpop.f32.mrb[77].mxu1 }
 0x2de   : > { %v6662_v4 = vadd.f32 %v3520_v55, %v2654_v5  ;;  %v3522_v9 = vpop.f32.mrb[13].mxu0  ;;  %v6664_v10 = vpop.f32.mrb[78].mxu1 }
 0x2df   : > { %v3523_v20 = vpop.f32.mrb[14].mxu0  ;;  %v3075_v21 = vpop.f32.mrb[79].mxu1  ;;  %v2673_v9 = vadd.f32 %v6605_v26, %v6423_v30  ;;  %v2681_v30 = vadd.f32 %v6605_v26, %v6432_v39  ;;  %v2689_v39 = vadd.f32 %v6605_v26, %v6440_v48  ;;  %v4839_v48 = vadd.f32 %v6605_v26, %v6544_v63 }
 0x2e0   : > { %v6669_v11 = vadd.f32 %v3523_v20, %v2657_v62  ;;  %v3525_v25 = vpop.f32.mrb[15].mxu0  ;;  %v4843_v63 = vadd.f32 %v6605_v26, %v6552_v12  ;;  %v4847_v12 = vadd.f32 %v6605_v26, %v6560_v23  ;;  %v4851_v23 = vadd.f32 %v6605_v26, %v6568_v0 }
 0x2e1   : > { %4766 = vmatmul.mubr.bf16.gmra.mrb[184].mxu1 %v5748_v58  ;;  %v4855_v0 = vadd.f32 %v6605_v26, %v6576_v42  ;;  %v4859_v42 = vadd.f32 %v6605_v26, %v6584_v53  ;;  %v4863_v53 = vadd.f32 %v6605_v26, %v6592_v3  ;;  %v4867_v3 = vadd.f32 %v6605_v26, %v6600_v17 }
 0x2e2   : > { %3735 = vmatmul.mubr.bf16.gmra.mrb[120].mxu0 %v5747_v15  ;;  %4769 = vmatprep.mubr.bf16.mxu1 %v5751_v16  ;;  %v4871_v17 = vadd.f32 %v6605_v26, %v6616_v41 }
 0x2e3   : > { %3742 = vmatprep.mubr.bf16.mxu0 %v5749_v60 }
 0x2e4   : > { %v6673_v28 = vpop.f32.mrb[80].mxu1 }
 0x2e5   : > { %v3528_v32 = vpop.f32.mrb[16].mxu0  ;;  %v3080_v33 = vpop.f32.mrb[81].mxu1 }
 0x2e6   : > { %v6678_v6 = vadd.f32 %v3528_v32, %v2662_v14  ;;  %v3530_v45 = vpop.f32.mrb[17].mxu0  ;;  %v6680_v46 = vpop.f32.mrb[82].mxu1 }
 0x2e7   : > { %v3531_v51 = vpop.f32.mrb[18].mxu0  ;;  %v3083_v5 = vpop.f32.mrb[83].mxu1 }
 0x2e8   : > { %v6683_v55 = vadd.f32 %v3531_v51, %v2665_v43  ;;  %v3533_v56 = vpop.f32.mrb[19].mxu0 }
 0x2e9   : > { %4770 = vmatmul.mubr.bf16.gmra.mrb[188].mxu1 %v5753_v35 }
 0x2ea   : > { %3743 = vmatmul.mubr.bf16.gmra.mrb[124].mxu0 %v5752_v50 }
 0x2ec   : > { %v6687_v58 = vpop.f32.mrb[84].mxu1 }
 0x2ed   : > { %v3536_v62 = vpop.f32.mrb[20].mxu0  ;;  %v3088_v22 = vpop.f32.mrb[85].mxu1 }
 0x2ee   : > { %v6691_v15 = vadd.f32 %v3536_v62, %v2670_v19  ;;  %v3538_v16 = vpop.f32.mrb[21].mxu0  ;;  %v6693_v20 = vpop.f32.mrb[86].mxu1 }
 0x2ef   : > { %v3539_v21 = vpop.f32.mrb[22].mxu0  ;;  %v3091_v60 = vpop.f32.mrb[87].mxu1 }
 0x2f0   : > { %v6695_v25 = vadd.f32 %v3539_v21, %v2673_v9  ;;  %v3541_v14 = vpop.f32.mrb[23].mxu0 }
 0x2f4   : > { %v6699_v32 = vpop.f32.mrb[88].mxu1 }
 0x2f5   : > { %v3544_v33 = vpop.f32.mrb[24].mxu0  ;;  %v3096_v35 = vpop.f32.mrb[89].mxu1 }
 0x2f6   : > { %v6703_v43 = vadd.f32 %v3544_v33, %v2678_v27  ;;  %v3546_v45 = vpop.f32.mrb[25].mxu0  ;;  %v6705_v50 = vpop.f32.mrb[90].mxu1 }
 0x2f7   : > { %v3547_v51 = vpop.f32.mrb[26].mxu0  ;;  %v3099_v5 = vpop.f32.mrb[91].mxu1 }
 0x2f8   : > { %v6707_v56 = vadd.f32 %v3547_v51, %v2681_v30  ;;  %v3549_v19 = vpop.f32.mrb[27].mxu0 }
 0x2fc   : > { %v6711_v62 = vpop.f32.mrb[92].mxu1 }
 0x2fd   : > { %v3552_v22 = vpop.f32.mrb[28].mxu0  ;;  %v3104_v9 = vpop.f32.mrb[93].mxu1 }
 0x2fe   : > { %v6715_v16 = vadd.f32 %v3552_v22, %v2686_v36  ;;  %v3554_v21 = vpop.f32.mrb[29].mxu0  ;;  %v6717_v60 = vpop.f32.mrb[94].mxu1 }
 0x2ff   : > { %v3555_v14 = vpop.f32.mrb[30].mxu0  ;;  %v3107_v27 = vpop.f32.mrb[95].mxu1 }
 0x300   : > { %v6719_v33 = vadd.f32 %v3555_v14, %v2689_v39  ;;  %v3557_v35 = vpop.f32.mrb[31].mxu0 }
 0x304   : > { %v6723_v30 = vpop.f32.mrb[96].mxu1 }
 0x305   : > { %7116 = vst [vmem:[#allocation12_spill] sm:$0xff] %v6723_v30  ;;  %v3560_v45 = vpop.f32.mrb[32].mxu0  ;;  %v3112_v51 = vpop.f32.mrb[97].mxu1 }
 0x306   : > { %v6727_v5 = vadd.f32 %v4837_v44, %v3560_v45  ;;  %v3562_v19 = vpop.f32.mrb[33].mxu0  ;;  %v6729_v36 = vpop.f32.mrb[98].mxu1 }
 0x307   : > { %7117 = vst [vmem:[#allocation13_spill] sm:$0xff] %v6729_v36  ;;  %v3563_v22 = vpop.f32.mrb[34].mxu0  ;;  %v3115_v9 = vpop.f32.mrb[99].mxu1 }
 0x308   : > { %v6731_v39 = vadd.f32 %v4839_v48, %v3563_v22  ;;  %v3565_v21 = vpop.f32.mrb[35].mxu0 }
 0x30c   : > { %v6735_v14 = vpop.f32.mrb[100].mxu1 }
 0x30d   : > { %7118 = vst [vmem:[#allocation14_spill] sm:$0xff] %v6735_v14  ;;  %v3568_v27 = vpop.f32.mrb[36].mxu0  ;;  %v3120_v35 = vpop.f32.mrb[101].mxu1 }
 0x30e   : > { %v6739_v44 = vadd.f32 %v4841_v59, %v3568_v27  ;;  %v3570_v45 = vpop.f32.mrb[37].mxu0  ;;  %v6741_v51 = vpop.f32.mrb[102].mxu1 }
 0x30f   : > { %7119 = vst [vmem:[#allocation15_spill] sm:$0xff] %v6741_v51  ;;  %v3571_v19 = vpop.f32.mrb[38].mxu0  ;;  %v3123_v9 = vpop.f32.mrb[103].mxu1 }
 0x310   : > { %v6743_v48 = vadd.f32 %v4843_v63, %v3571_v19  ;;  %v3573_v22 = vpop.f32.mrb[39].mxu0 }
 0x314   : > { %v6747_v21 = vpop.f32.mrb[104].mxu1 }
 0x315   : > { %7120 = vst [vmem:[#allocation16_spill] sm:$0xff] %v6747_v21  ;;  %v3576_v14 = vpop.f32.mrb[40].mxu0  ;;  %v3128_v35 = vpop.f32.mrb[105].mxu1 }
 0x316   : > { %v6751_v59 = vadd.f32 %v4845_v8, %v3576_v14  ;;  %v3578_v27 = vpop.f32.mrb[41].mxu0  ;;  %v6753_v45 = vpop.f32.mrb[106].mxu1 }
 0x317   : > { %7121 = vst [vmem:[#allocation17_spill] sm:$0xff] %v6753_v45  ;;  %v3579_v51 = vpop.f32.mrb[42].mxu0  ;;  %v3131_v9 = vpop.f32.mrb[107].mxu1 }
 0x318   : > { %v6755_v63 = vadd.f32 %v4847_v12, %v3579_v51  ;;  %v3581_v19 = vpop.f32.mrb[43].mxu0 }
 0x31c   : > { %v6759_v22 = vpop.f32.mrb[108].mxu1 }
 0x31d   : > { %7122 = vst [vmem:[#allocation18_spill] sm:$0xff] %v6759_v22  ;;  %v3584_v21 = vpop.f32.mrb[44].mxu0  ;;  %v3136_v35 = vpop.f32.mrb[109].mxu1 }
 0x31e   : > { %v6763_v14 = vadd.f32 %v4849_v18, %v3584_v21  ;;  %v3586_v8 = vpop.f32.mrb[45].mxu0  ;;  %v6765_v27 = vpop.f32.mrb[110].mxu1 }
 0x31f   : > { %7123 = vst [vmem:[#allocation19_spill] sm:$0xff] %v6765_v27  ;;  %v3587_v45 = vpop.f32.mrb[46].mxu0  ;;  %v3139_v9 = vpop.f32.mrb[111].mxu1 }
 0x320   : > { %v6767_v51 = vadd.f32 %v4851_v23, %v3587_v45  ;;  %v3589_v12 = vpop.f32.mrb[47].mxu0 }
 0x324   : > { %v6771_v19 = vpop.f32.mrb[112].mxu1 }
 0x325   : > { %7124 = vst [vmem:[#allocation20_spill] sm:$0xff] %v6771_v19  ;;  %v3592_v22 = vpop.f32.mrb[48].mxu0  ;;  %v3144_v35 = vpop.f32.mrb[113].mxu1 }
 0x326   : > { %v6775_v21 = vadd.f32 %v4853_v29, %v3592_v22  ;;  %v3594_v18 = vpop.f32.mrb[49].mxu0  ;;  %v6777_v8 = vpop.f32.mrb[114].mxu1 }
 0x327   : > { %7125 = vst [vmem:[#allocation21_spill] sm:$0xff] %v6777_v8  ;;  %v3595_v27 = vpop.f32.mrb[50].mxu0  ;;  %v3147_v9 = vpop.f32.mrb[115].mxu1 }
 0x328   : > { %v6779_v45 = vadd.f32 %v4855_v0, %v3595_v27  ;;  %v3597_v23 = vpop.f32.mrb[51].mxu0 }
 0x32c   : > { %v6783_v12 = vpop.f32.mrb[116].mxu1 }
 0x32d   : > { %7126 = vst [vmem:[#allocation22_spill] sm:$0xff] %v6783_v12  ;;  %v3600_v19 = vpop.f32.mrb[52].mxu0  ;;  %v3152_v35 = vpop.f32.mrb[117].mxu1 }
 0x32e   : > { %v6787_v22 = vadd.f32 %v4857_v38, %v3600_v19  ;;  %v3602_v29 = vpop.f32.mrb[53].mxu0  ;;  %v6789_v18 = vpop.f32.mrb[118].mxu1 }
 0x32f   : > { %7127 = vst [vmem:[#allocation23_spill] sm:$0xff] %v6789_v18  ;;  %v3603_v8 = vpop.f32.mrb[54].mxu0  ;;  %v3155_v9 = vpop.f32.mrb[119].mxu1 }
 0x330   : > { %v6791_v27 = vadd.f32 %v4859_v42, %v3603_v8  ;;  %v3605_v0 = vpop.f32.mrb[55].mxu0 }
 0x334   : > { %v6795_v23 = vpop.f32.mrb[120].mxu1 }
 0x335   : > { %7128 = vst [vmem:[#allocation24_spill] sm:$0xff] %v6795_v23  ;;  %v3608_v12 = vpop.f32.mrb[56].mxu0  ;;  %v3160_v35 = vpop.f32.mrb[121].mxu1 }
 0x336   : > { %v6799_v19 = vadd.f32 %v4861_v47, %v3608_v12  ;;  %v3610_v38 = vpop.f32.mrb[57].mxu0  ;;  %v6801_v29 = vpop.f32.mrb[122].mxu1 }
 0x337   : > { %7129 = vst [vmem:[#allocation25_spill] sm:$0xff] %v6801_v29  ;;  %v3611_v18 = vpop.f32.mrb[58].mxu0  ;;  %v3163_v8 = vpop.f32.mrb[123].mxu1 }
 0x338   : > { %v6803_v42 = vadd.f32 %v4863_v53, %v3611_v18  ;;  %v3613_v9 = vpop.f32.mrb[59].mxu0 }
 0x33a   : > { %7130 = vst [vmem:[#allocation26_spill] sm:$0xff] %v6803_v42 }
 0x33c   : > { %v6807_v0 = vpop.f32.mrb[124].mxu1 }
 0x33d   : > { %7131 = vst [vmem:[#allocation27_spill] sm:$0xff] %v6807_v0  ;;  %v3616_v35 = vpop.f32.mrb[60].mxu0  ;;  %v3168_v23 = vpop.f32.mrb[125].mxu1 }
 0x33e   : > { %v6811_v12 = vadd.f32 %v4865_v61, %v3616_v35  ;;  %v3618_v47 = vpop.f32.mrb[61].mxu0  ;;  %v6813_v38 = vpop.f32.mrb[126].mxu1 }
 0x33f   : > { %7132 = vst [vmem:[#allocation28_spill] sm:$0xff] %v6813_v38  ;;  %v3619_v29 = vpop.f32.mrb[62].mxu0  ;;  %v3171_v8 = vpop.f32.mrb[127].mxu1 }
 0x340   : > { %v6815_v18 = vadd.f32 %v4867_v3, %v3619_v29  ;;  %v3621_v53 = vpop.f32.mrb[63].mxu0 }
 0x344   : > { %v4711_v9 = vpop.f32.mrb[128].mxu1 }
 0x345   : > { %v3624_v0 = vpop.f32.mrb[64].mxu0  ;;  %v3794_v23 = vadd.f32 %v6630_v1, %v4711_v9  ;;  %v3785_v36 = vpop.f32.mrb[129].mxu1 }
 0x346   : > { %v6823_v61 = vadd.f32 %v4869_v13, %v3624_v0  ;;  %v3626_v35 = vpop.f32.mrb[65].mxu0  ;;  %v3786_v47 = vadd.f32 %v6614_v37, %v3785_v36  ;;  %v4712_v29 = vpop.f32.mrb[130].mxu1 }
 0x347   : > { %v4042_v3 = vmax.f32 %v3794_v23, 0.0  ;;  %v3627_v8 = vpop.f32.mrb[66].mxu0  ;;  %v3797_v53 = vadd.f32 %v6637_v57, %v4712_v29  ;;  %v3788_v38 = vpop.f32.mrb[131].mxu1  ;;  %v4873_v57 = vadd.f32 %v6605_v26, %v6625_v54 }
 0x348   : > { %v4040_v31 = vmax.f32 %v3786_v47, 0.0  ;;  %v6827_v30 = vadd.f32 %v4871_v17, %v3627_v8  ;;  %v3629_v42 = vpop.f32.mrb[67].mxu0  ;;  %v3789_v1 = vadd.f32 %v6621_v49, %v3788_v38  ;;  %v4875_v38 = vadd.f32 %v6605_v26, %v6632_v7 }
 0x349   : > { %4106 = vst [vmem:[%s6830_s20 + $0x10] sm:$0xff] %v4042_v3  ;;  %v4043_v37 = vmax.f32 %v3797_v53, 0.0 }
 0x34a   : > { %4104 = vst [vmem:[%s6830_s20] sm:$0xff] %v4040_v31  ;;  %v4041_v41 = vmax.f32 %v3789_v1, 0.0 }
 0x34b   : > { %4107 = vst [vmem:[%s6830_s20 + $0x18] sm:$0xff] %v4043_v37 }
 0x34c   : > { %4105 = vst [vmem:[%s6830_s20 + $0x8] sm:$0xff] %v4041_v41  ;;  %v4715_v36 = vpop.f32.mrb[132].mxu1 }
 0x34d   : > { %v3632_v0 = vpop.f32.mrb[68].mxu0  ;;  %v3810_v49 = vadd.f32 %v6662_v4, %v4715_v36  ;;  %v3801_v42 = vpop.f32.mrb[133].mxu1 }
 0x34e   : > { %v6841_v13 = vadd.f32 %v4873_v57, %v3632_v0  ;;  %v3634_v9 = vpop.f32.mrb[69].mxu0  ;;  %v3802_v23 = vadd.f32 %v6646_v34, %v3801_v42  ;;  %v4716_v17 = vpop.f32.mrb[134].mxu1  ;;  %v4877_v34 = vadd.f32 %v6605_v26, %v6641_v24  ;;  %v4879_v57 = vadd.f32 %v6605_v26, %v6648_v40 }
 0x34f   : > { %v4046_v54 = vmax.f32 %v3810_v49, 0.0  ;;  %v3635_v35 = vpop.f32.mrb[70].mxu0  ;;  %v3813_v47 = vadd.f32 %v6669_v11, %v4716_v17  ;;  %v3804_v29 = vpop.f32.mrb[135].mxu1 }
 0x350   : > { %v4044_v3 = vmax.f32 %v3802_v23, 0.0  ;;  %v6845_v4 = vadd.f32 %v4875_v38, %v3635_v35  ;;  %v3637_v8 = vpop.f32.mrb[71].mxu0  ;;  %v3805_v53 = vadd.f32 %v6653_v2, %v3804_v29 }
 0x351   : > { %4110 = vst [vmem:[%s6830_s20 + $0x30] sm:$0xff] %v4046_v54  ;;  %v4047_v7 = vmax.f32 %v3813_v47, 0.0  ;;  %v4883_v8 = vadd.f32 %v6605_v26, %v6664_v10 }
 0x352   : > { %4108 = vst [vmem:[%s6830_s20 + $0x20] sm:$0xff] %v4044_v3  ;;  %v4045_v31 = vmax.f32 %v3805_v53, 0.0 }
 0x353   : > { %4111 = vst [vmem:[%s6830_s20 + $0x38] sm:$0xff] %v4047_v7 }
 0x354   : > { %4109 = vst [vmem:[%s6830_s20 + $0x28] sm:$0xff] %v4045_v31  ;;  %v4719_v1 = vpop.f32.mrb[136].mxu1 }
 0x355   : > { %v3640_v37 = vpop.f32.mrb[72].mxu0  ;;  %v3826_v11 = vadd.f32 %v6691_v15, %v4719_v1  ;;  %v3817_v41 = vpop.f32.mrb[137].mxu1 }
 0x356   : > { %v6857_v2 = vadd.f32 %v4877_v34, %v3640_v37  ;;  %v3642_v36 = vpop.f32.mrb[73].mxu0  ;;  %v3818_v0 = vadd.f32 %v6678_v6, %v3817_v41  ;;  %v4720_v49 = vpop.f32.mrb[138].mxu1  ;;  %v4881_v6 = vadd.f32 %v6605_v26, %v6657_v52 }
 0x357   : > { %v4050_v24 = vmax.f32 %v3826_v11, 0.0  ;;  %v3643_v42 = vpop.f32.mrb[74].mxu0  ;;  %v3829_v38 = vadd.f32 %v6695_v25, %v4720_v49  ;;  %v3820_v9 = vpop.f32.mrb[139].mxu1 }
 0x358   : > { %v4048_v23 = vmax.f32 %v3818_v0, 0.0  ;;  %v6861_v15 = vadd.f32 %v4879_v57, %v3643_v42  ;;  %v3645_v17 = vpop.f32.mrb[75].mxu0  ;;  %v3821_v54 = vadd.f32 %v6683_v55, %v3820_v9  ;;  %v4887_v42 = vadd.f32 %v6605_v26, %v6680_v46 }
 0x359   : > { %4114 = vst [vmem:[%s6830_s20 + $0x50] sm:$0xff] %v4050_v24  ;;  %v4051_v40 = vmax.f32 %v3829_v38, 0.0 }
 0x35a   : > { %4112 = vst [vmem:[%s6830_s20 + $0x40] sm:$0xff] %v4048_v23  ;;  %v4049_v35 = vmax.f32 %v3821_v54, 0.0 }
 0x35b   : > { %4115 = vst [vmem:[%s6830_s20 + $0x58] sm:$0xff] %v4051_v40 }
 0x35c   : > { %4113 = vst [vmem:[%s6830_s20 + $0x48] sm:$0xff] %v4049_v35  ;;  %v4723_v47 = vpop.f32.mrb[140].mxu1 }
 0x35d   : > { %v3648_v29 = vpop.f32.mrb[76].mxu0  ;;  %v3842_v25 = vadd.f32 %v6715_v16, %v4723_v47  ;;  %v3833_v3 = vpop.f32.mrb[141].mxu1 }
 0x35e   : > { %v6873_v55 = vadd.f32 %v4881_v6, %v3648_v29  ;;  %v3650_v53 = vpop.f32.mrb[77].mxu0  ;;  %v3834_v7 = vadd.f32 %v6703_v43, %v3833_v3  ;;  %v4724_v31 = vpop.f32.mrb[142].mxu1  ;;  %v4885_v43 = vadd.f32 %v6605_v26, %v6673_v28 }
 0x35f   : > { %v4054_v52 = vmax.f32 %v3842_v25, 0.0  ;;  %v3651_v34 = vpop.f32.mrb[78].mxu0  ;;  %v3845_v1 = vadd.f32 %v6719_v33, %v4724_v31  ;;  %v3836_v37 = vpop.f32.mrb[143].mxu1  ;;  %v4891_v53 = vadd.f32 %v6605_v26, %v6693_v20 }
 0x360   : > { %v4052_v11 = vmax.f32 %v3834_v7, 0.0  ;;  %v6877_v16 = vadd.f32 %v4883_v8, %v3651_v34  ;;  %v3653_v41 = vpop.f32.mrb[79].mxu0  ;;  %v3837_v57 = vadd.f32 %v6707_v56, %v3836_v37 }
 0x361   : > { %4118 = vst [vmem:[%s6830_s20 + $0x70] sm:$0xff] %v4054_v52  ;;  %v4055_v10 = vmax.f32 %v3845_v1, 0.0 }
 0x362   : > { %4116 = vst [vmem:[%s6830_s20 + $0x60] sm:$0xff] %v4052_v11  ;;  %v4053_v36 = vmax.f32 %v3837_v57, 0.0 }
 0x363   : > { %4119 = vst [vmem:[%s6830_s20 + $0x78] sm:$0xff] %v4055_v10 }
 0x364   : > { %4117 = vst [vmem:[%s6830_s20 + $0x68] sm:$0xff] %v4053_v36  ;;  %v4727_v0 = vpop.f32.mrb[144].mxu1 }
 0x365   : > { %v3656_v49 = vpop.f32.mrb[80].mxu0  ;;  %v3858_v33 = vadd.f32 %v6739_v44, %v4727_v0  ;;  %v3849_v24 = vpop.f32.mrb[145].mxu1 }
 0x366   : > { %v6889_v56 = vadd.f32 %v4885_v43, %v3656_v49  ;;  %v3658_v38 = vpop.f32.mrb[81].mxu0  ;;  %v3850_v9 = vadd.f32 %v6727_v5, %v3849_v24  ;;  %v4728_v23 = vpop.f32.mrb[146].mxu1  ;;  %v4889_v5 = vadd.f32 %v6605_v26, %v6687_v58  ;;  %v4895_v49 = vadd.f32 %v6605_v26, %v6705_v50 }
 0x367   : > { %v4058_v28 = vmax.f32 %v3858_v33, 0.0  ;;  %v3659_v17 = vpop.f32.mrb[82].mxu0  ;;  %v3861_v54 = vadd.f32 %v6743_v48, %v4728_v23  ;;  %v3852_v40 = vpop.f32.mrb[147].mxu1 }
 0x368   : > { %v4056_v35 = vmax.f32 %v3850_v9, 0.0  ;;  %v6893_v44 = vadd.f32 %v4887_v42, %v3659_v17  ;;  %v3661_v6 = vpop.f32.mrb[83].mxu0  ;;  %v3853_v47 = vadd.f32 %v6731_v39, %v3852_v40 }
 0x369   : > { %4122 = vst [vmem:[%s6830_s20 + $0x90] sm:$0xff] %v4058_v28  ;;  %v4059_v46 = vmax.f32 %v3861_v54, 0.0 }
 0x36a   : > { %4120 = vst [vmem:[%s6830_s20 + $0x80] sm:$0xff] %v4056_v35  ;;  %v4057_v29 = vmax.f32 %v3853_v47, 0.0 }
 0x36b   : > { %4123 = vst [vmem:[%s6830_s20 + $0x98] sm:$0xff] %v4059_v46  ;;  %v4899_v46 = vadd.f32 %v6605_v26, %v6717_v60 }
 0x36c   : > { %4121 = vst [vmem:[%s6830_s20 + $0x88] sm:$0xff] %v4057_v29  ;;  %v4731_v25 = vpop.f32.mrb[148].mxu1 }
 0x36d   : > { %v3664_v3 = vpop.f32.mrb[84].mxu0  ;;  %v3874_v48 = vadd.f32 %v6763_v14, %v4731_v25  ;;  %v3865_v8 = vpop.f32.mrb[149].mxu1 }
 0x36e   : > { %v6905_v39 = vadd.f32 %v4889_v5, %v3664_v3  ;;  %v3666_v7 = vpop.f32.mrb[85].mxu0  ;;  %v3866_v31 = vadd.f32 %v6751_v59, %v3865_v8  ;;  %v4732_v52 = vpop.f32.mrb[150].mxu1  ;;  %v4893_v59 = vadd.f32 %v6605_v26, %v6699_v32 }
 0x36f   : > { %v4062_v58 = vmax.f32 %v3874_v48, 0.0  ;;  %v3667_v34 = vpop.f32.mrb[86].mxu0  ;;  %v3877_v1 = vadd.f32 %v6767_v51, %v4732_v52  ;;  %v3868_v37 = vpop.f32.mrb[151].mxu1 }
 0x370   : > { %v4060_v11 = vmax.f32 %v3866_v31, 0.0  ;;  %v6909_v14 = vadd.f32 %v4891_v53, %v3667_v34  ;;  %v3669_v41 = vpop.f32.mrb[87].mxu0  ;;  %v3869_v57 = vadd.f32 %v6755_v63, %v3868_v37  ;;  %v7133_v31 = vld [vmem:[#allocation26_spill] sm:$0xff]  ;;  %v7134_v34 = vld [vmem:[#allocation12_spill] sm:$0xff] }
 0x371   : > { %4126 = vst [vmem:[%s6830_s20 + $0xb0] sm:$0xff] %v4062_v58  ;;  %v4063_v20 = vmax.f32 %v3877_v1, 0.0  ;;  %v7135_v41 = vld [vmem:[#allocation13_spill] sm:$0xff] }
 0x372   : > { %4124 = vst [vmem:[%s6830_s20 + $0xa0] sm:$0xff] %v4060_v11  ;;  %v4061_v10 = vmax.f32 %v3869_v57, 0.0  ;;  %v4903_v57 = vadd.f32 %v6605_v26, %v7135_v41 }
 0x373   : > { %4127 = vst [vmem:[%s6830_s20 + $0xb8] sm:$0xff] %v4063_v20 }
 0x374   : > { %4125 = vst [vmem:[%s6830_s20 + $0xa8] sm:$0xff] %v4061_v10  ;;  %v4735_v36 = vpop.f32.mrb[152].mxu1 }
 0x375   : > { %v3672_v43 = vpop.f32.mrb[88].mxu0  ;;  %v3890_v51 = vadd.f32 %v6787_v22, %v4735_v36  ;;  %v3881_v0 = vpop.f32.mrb[153].mxu1 }
 0x376   : > { %v6921_v63 = vadd.f32 %v4893_v59, %v3672_v43  ;;  %v3674_v33 = vpop.f32.mrb[89].mxu0  ;;  %v3882_v24 = vadd.f32 %v6775_v21, %v3881_v0  ;;  %v4736_v42 = vpop.f32.mrb[154].mxu1  ;;  %v4897_v21 = vadd.f32 %v6605_v26, %v6711_v62 }
 0x377   : > { %v4066_v32 = vmax.f32 %v3890_v51, 0.0  ;;  %v3675_v38 = vpop.f32.mrb[90].mxu0  ;;  %v3893_v9 = vadd.f32 %v6791_v27, %v4736_v42  ;;  %v3884_v23 = vpop.f32.mrb[155].mxu1 }
 0x378   : > { %v4064_v28 = vmax.f32 %v3882_v24, 0.0  ;;  %v6925_v22 = vadd.f32 %v4895_v49, %v3675_v38  ;;  %v3677_v17 = vpop.f32.mrb[91].mxu0  ;;  %v3885_v54 = vadd.f32 %v6779_v45, %v3884_v23 }
 0x379   : > { %4130 = vst [vmem:[%s6830_s20 + $0xd0] sm:$0xff] %v4066_v32  ;;  %v4067_v50 = vmax.f32 %v3893_v9, 0.0  ;;  %v7136_v9 = vld [vmem:[#allocation14_spill] sm:$0xff] }
 0x37a   : > { %4128 = vst [vmem:[%s6830_s20 + $0xc0] sm:$0xff] %v4064_v28  ;;  %v4065_v40 = vmax.f32 %v3885_v54, 0.0  ;;  %v7137_v54 = vld [vmem:[#allocation15_spill] sm:$0xff] }
 0x37b   : > { %4131 = vst [vmem:[%s6830_s20 + $0xd8] sm:$0xff] %v4067_v50  ;;  %v4907_v50 = vadd.f32 %v6605_v26, %v7137_v54 }
 0x37c   : > { %4129 = vst [vmem:[%s6830_s20 + $0xc8] sm:$0xff] %v4065_v40  ;;  %v4739_v35 = vpop.f32.mrb[156].mxu1 }
 0x37d   : > { %v3680_v6 = vpop.f32.mrb[92].mxu0  ;;  %v3906_v27 = vadd.f32 %v6811_v12, %v4739_v35  ;;  %v3897_v47 = vpop.f32.mrb[157].mxu1 }
 0x37e   : > { %v6937_v45 = vadd.f32 %v4897_v21, %v3680_v6  ;;  %v3682_v29 = vpop.f32.mrb[93].mxu0  ;;  %v3898_v5 = vadd.f32 %v6799_v19, %v3897_v47  ;;  %v4740_v25 = vpop.f32.mrb[158].mxu1  ;;  %v4901_v19 = vadd.f32 %v6605_v26, %v7134_v34 }
 0x37f   : > { %v4070_v62 = vmax.f32 %v3906_v27, 0.0  ;;  %v3683_v3 = vpop.f32.mrb[94].mxu0  ;;  %v3909_v48 = vadd.f32 %v6815_v18, %v4740_v25  ;;  %v3900_v8 = vpop.f32.mrb[159].mxu1 }
 0x380   : > { %v4068_v53 = vmax.f32 %v3898_v5, 0.0  ;;  %v6941_v12 = vadd.f32 %v4899_v46, %v3683_v3  ;;  %v3685_v7 = vpop.f32.mrb[95].mxu0  ;;  %v3901_v52 = vadd.f32 %v7133_v31, %v3900_v8  ;;  %v7139_v31 = vld [vmem:[#allocation17_spill] sm:$0xff] }
 0x381   : > { %4134 = vst [vmem:[%s6830_s20 + $0xf0] sm:$0xff] %v4070_v62  ;;  %v4071_v60 = vmax.f32 %v3909_v48, 0.0  ;;  %v7138_v48 = vld [vmem:[#allocation16_spill] sm:$0xff] }
 0x382   : > { %4132 = vst [vmem:[%s6830_s20 + $0xe0] sm:$0xff] %v4068_v53  ;;  %v4069_v58 = vmax.f32 %v3901_v52, 0.0  ;;  %v4911_v52 = vadd.f32 %v6605_v26, %v7139_v31  ;;  %v7144_v31 = vld [vmem:[#allocation22_spill] sm:$0xff] }
 0x383   : > { %4135 = vst [vmem:[%s6830_s20 + $0xf8] sm:$0xff] %v4071_v60 }
 0x384   : > { %4133 = vst [vmem:[%s6830_s20 + $0xe8] sm:$0xff] %v4069_v58  ;;  %v4743_v1 = vpop.f32.mrb[160].mxu1 }
 0x385   : > { %v3688_v37 = vpop.f32.mrb[96].mxu0  ;;  %v3922_v18 = vadd.f32 %v6841_v13, %v4743_v1  ;;  %v3913_v11 = vpop.f32.mrb[161].mxu1 }
 0x386   : > { %v6953_v20 = vadd.f32 %v4901_v19, %v3688_v37  ;;  %v3690_v10 = vpop.f32.mrb[97].mxu0  ;;  %v3914_v59 = vadd.f32 %v6823_v61, %v3913_v11  ;;  %v4744_v36 = vpop.f32.mrb[162].mxu1  ;;  %v4905_v61 = vadd.f32 %v6605_v26, %v7136_v9 }
 0x387   : > { %v4074_v43 = vmax.f32 %v3922_v18, 0.0  ;;  %v3691_v51 = vpop.f32.mrb[98].mxu0  ;;  %v3925_v0 = vadd.f32 %v6845_v4, %v4744_v36  ;;  %v3916_v49 = vpop.f32.mrb[163].mxu1  ;;  %v7140_v36 = vld [vmem:[#allocation18_spill] sm:$0xff] }
 0x388   : > { %v4072_v33 = vmax.f32 %v3914_v59, 0.0  ;;  %v6957_v13 = vadd.f32 %v4903_v57, %v3691_v51  ;;  %v3693_v24 = vpop.f32.mrb[99].mxu0  ;;  %v3917_v42 = vadd.f32 %v6827_v30, %v3916_v49  ;;  %v7141_v49 = vld [vmem:[#allocation19_spill] sm:$0xff] }
 0x389   : > { %4138 = vst [vmem:[%s6830_s20 + $0x110] sm:$0xff] %v4074_v43  ;;  %v4075_v32 = vmax.f32 %v3925_v0, 0.0 }
 0x38a   : > { %4136 = vst [vmem:[%s6830_s20 + $0x100] sm:$0xff] %v4072_v33  ;;  %v4073_v38 = vmax.f32 %v3917_v42, 0.0  ;;  %v4915_v33 = vadd.f32 %v6605_v26, %v7141_v49 }
 0x38b   : > { %4139 = vst [vmem:[%s6830_s20 + $0x118] sm:$0xff] %v4075_v32 }
 0x38c   : > { %4137 = vst [vmem:[%s6830_s20 + $0x108] sm:$0xff] %v4073_v38  ;;  %v4747_v23 = vpop.f32.mrb[164].mxu1 }
 0x38d   : > { %v3696_v28 = vpop.f32.mrb[100].mxu0  ;;  %v3938_v4 = vadd.f32 %v6873_v55, %v4747_v23  ;;  %v3929_v17 = vpop.f32.mrb[165].mxu1 }
 0x38e   : > { %v6969_v30 = vadd.f32 %v4905_v61, %v3696_v28  ;;  %v3698_v40 = vpop.f32.mrb[101].mxu0  ;;  %v3930_v21 = vadd.f32 %v6857_v2, %v3929_v17  ;;  %v4748_v35 = vpop.f32.mrb[166].mxu1  ;;  %v4909_v2 = vadd.f32 %v6605_v26, %v7138_v48 }
 0x38f   : > { %v4078_v6 = vmax.f32 %v3938_v4, 0.0  ;;  %v3699_v27 = vpop.f32.mrb[102].mxu0  ;;  %v3941_v47 = vadd.f32 %v6877_v16, %v4748_v35  ;;  %v3932_v46 = vpop.f32.mrb[167].mxu1 }
 0x390   : > { %v4076_v29 = vmax.f32 %v3930_v21, 0.0  ;;  %v6973_v55 = vadd.f32 %v4907_v50, %v3699_v27  ;;  %v3701_v5 = vpop.f32.mrb[103].mxu0  ;;  %v3933_v25 = vadd.f32 %v6861_v15, %v3932_v46  ;;  %v7007_v50 = vld [vmem:[#allocation7] ss:$0 sm:$0xff]  ;;  %v7143_v27 = vld [vmem:[#allocation21_spill] sm:$0xff] }
 0x391   : > { %4142 = vst [vmem:[%s6830_s20 + $0x130] sm:$0xff] %v4078_v6  ;;  %v4079_v62 = vmax.f32 %v3941_v47, 0.0 }
 0x392   : > { %4140 = vst [vmem:[%s6830_s20 + $0x120] sm:$0xff] %v4076_v29  ;;  %v4077_v3 = vmax.f32 %v3933_v25, 0.0 }
 0x393   : > { %4143 = vst [vmem:[%s6830_s20 + $0x138] sm:$0xff] %v4079_v62 }
 0x394   : > { %4141 = vst [vmem:[%s6830_s20 + $0x128] sm:$0xff] %v4077_v3  ;;  %v4751_v8 = vpop.f32.mrb[168].mxu1 }
 0x395   : > { %v3704_v53 = vpop.f32.mrb[104].mxu0  ;;  %v3954_v16 = vadd.f32 %v6905_v39, %v4751_v8  ;;  %v3945_v7 = vpop.f32.mrb[169].mxu1 }
 0x396   : > { %v6985_v15 = vadd.f32 %v4909_v2, %v3704_v53  ;;  %v3706_v60 = vpop.f32.mrb[105].mxu0  ;;  %v3946_v58 = vadd.f32 %v6889_v56, %v3945_v7  ;;  %v4752_v34 = vpop.f32.mrb[170].mxu1  ;;  %v4913_v56 = vadd.f32 %v6605_v26, %v7140_v36 }
 0x397   : > { %v4082_v19 = vmax.f32 %v3954_v16, 0.0  ;;  %v3707_v1 = vpop.f32.mrb[106].mxu0  ;;  %v3957_v37 = vadd.f32 %v6909_v14, %v4752_v34  ;;  %v3948_v18 = vpop.f32.mrb[171].mxu1  ;;  %v7145_v34 = vld [vmem:[#allocation23_spill] sm:$0xff] }
 0x398   : > { %v4080_v11 = vmax.f32 %v3946_v58, 0.0  ;;  %v6989_v39 = vadd.f32 %v4911_v52, %v3707_v1  ;;  %v3709_v41 = vpop.f32.mrb[107].mxu0  ;;  %v3949_v57 = vadd.f32 %v6893_v44, %v3948_v18 }
 0x399   : > { %4146 = vst [vmem:[%s6830_s20 + $0x150] sm:$0xff] %v4082_v19  ;;  %v4083_v10 = vmax.f32 %v3957_v37, 0.0  ;;  %v4923_v19 = vadd.f32 %v7007_v50, %v7145_v34 }
 0x39a   : > { %4144 = vst [vmem:[%s6830_s20 + $0x140] sm:$0xff] %v4080_v11  ;;  %v4081_v59 = vmax.f32 %v3949_v57, 0.0 }
 0x39b   : > { %4147 = vst [vmem:[%s6830_s20 + $0x158] sm:$0xff] %v4083_v10 }
 0x39c   : > { %4145 = vst [vmem:[%s6830_s20 + $0x148] sm:$0xff] %v4081_v59  ;;  %v4755_v43 = vpop.f32.mrb[172].mxu1 }
 0x39d   : > { %v3712_v51 = vpop.f32.mrb[108].mxu0  ;;  %v3970_v14 = vadd.f32 %v6937_v45, %v4755_v43  ;;  %v3961_v0 = vpop.f32.mrb[173].mxu1 }
 0x39e   : > { %v4914_v44 = vadd.f32 %v4913_v56, %v3712_v51  ;;  %v3714_v24 = vpop.f32.mrb[109].mxu0  ;;  %v3962_v42 = vadd.f32 %v6921_v63, %v3961_v0  ;;  %v4756_v32 = vpop.f32.mrb[174].mxu1  ;;  %v7142_v63 = vld [vmem:[#allocation20_spill] sm:$0xff] }
 0x39f   : > { %v4086_v38 = vmax.f32 %v3970_v14, 0.0  ;;  %v3715_v9 = vpop.f32.mrb[110].mxu0  ;;  %v3973_v61 = vadd.f32 %v6941_v12, %v4756_v32  ;;  %v3964_v23 = vpop.f32.mrb[175].mxu1  ;;  %v4917_v40 = vadd.f32 %v7007_v50, %v7142_v63  ;;  %v7146_v0 = vld [vmem:[#allocation24_spill] sm:$0xff] }
 0x3a0   : > { %v4084_v28 = vmax.f32 %v3962_v42, 0.0  ;;  %v4916_v4 = vadd.f32 %v4915_v33, %v3715_v9  ;;  %v3717_v45 = vpop.f32.mrb[111].mxu0  ;;  %v3965_v17 = vadd.f32 %v6925_v22, %v3964_v23  ;;  %v4919_v22 = vadd.f32 %v7007_v50, %v7143_v27  ;;  %v7147_v42 = vld [vmem:[#allocation25_spill] sm:$0xff] }
 0x3a1   : > { %4150 = vst [vmem:[%s6830_s20 + $0x170] sm:$0xff] %v4086_v38  ;;  %v4087_v54 = vmax.f32 %v3973_v61, 0.0  ;;  %v4925_v49 = vadd.f32 %v7007_v50, %v7146_v0  ;;  %v4927_v32 = vadd.f32 %v7007_v50, %v7147_v42 }
 0x3a2   : > { %4148 = vst [vmem:[%s6830_s20 + $0x160] sm:$0xff] %v4084_v28  ;;  %v4085_v26 = vmax.f32 %v3965_v17, 0.0 }
 0x3a3   : > { %4151 = vst [vmem:[%s6830_s20 + $0x178] sm:$0xff] %v4087_v54 }
 0x3a4   : > { %4149 = vst [vmem:[%s6830_s20 + $0x168] sm:$0xff] %v4085_v26  ;;  %v4759_v21 = vpop.f32.mrb[176].mxu1 }
 0x3a5   : > { %v3720_v35 = vpop.f32.mrb[112].mxu0  ;;  %v3986_v12 = vadd.f32 %v6969_v30, %v4759_v21  ;;  %v3977_v6 = vpop.f32.mrb[177].mxu1 }
 0x3a6   : > { %v4918_v47 = vadd.f32 %v4917_v40, %v3720_v35  ;;  %v3722_v46 = vpop.f32.mrb[113].mxu0  ;;  %v3978_v29 = vadd.f32 %v6953_v20, %v3977_v6  ;;  %v4760_v5 = vpop.f32.mrb[178].mxu1  ;;  %v4921_v20 = vadd.f32 %v7007_v50, %v7144_v31  ;;  %v7148_v35 = vld [vmem:[#allocation27_spill] sm:$0xff] }
 0x3a7   : > { %v4090_v25 = vmax.f32 %v3986_v12, 0.0  ;;  %v3723_v62 = vpop.f32.mrb[114].mxu0  ;;  %v3989_v3 = vadd.f32 %v6973_v55, %v4760_v5  ;;  %v3980_v48 = vpop.f32.mrb[179].mxu1  ;;  %v4929_v12 = vadd.f32 %v7007_v50, %v7148_v35 }
 0x3a8   : > { %v4088_v2 = vmax.f32 %v3978_v29, 0.0  ;;  %v4920_v8 = vadd.f32 %v4919_v22, %v3723_v62  ;;  %v3725_v30 = vpop.f32.mrb[115].mxu0  ;;  %v3981_v53 = vadd.f32 %v6957_v13, %v3980_v48 }
 0x3a9   : > { %4154 = vst [vmem:[%s6830_s20 + $0x190] sm:$0xff] %v4090_v25  ;;  %v4091_v16 = vmax.f32 %v3989_v3, 0.0 }
 0x3aa   : > { %4152 = vst [vmem:[%s6830_s20 + $0x180] sm:$0xff] %v4088_v2  ;;  %v4089_v7 = vmax.f32 %v3981_v53, 0.0 }
 0x3ab   : > { %4155 = vst [vmem:[%s6830_s20 + $0x198] sm:$0xff] %v4091_v16 }
 0x3ac   : > { %4153 = vst [vmem:[%s6830_s20 + $0x188] sm:$0xff] %v4089_v7  ;;  %v4763_v52 = vpop.f32.mrb[180].mxu1 }
 0x3ad   : > { %v3728_v60 = vpop.f32.mrb[116].mxu0  ;;  %v4002_v58 = vadd.f32 %v4914_v44, %v4763_v52  ;;  %v3993_v55 = vpop.f32.mrb[181].mxu1 }
 0x3ae   : > { %v4922_v1 = vadd.f32 %v4921_v20, %v3728_v60  ;;  %v3730_v13 = vpop.f32.mrb[117].mxu0  ;;  %v3994_v37 = vadd.f32 %v6985_v15, %v3993_v55  ;;  %v4764_v18 = vpop.f32.mrb[182].mxu1 }
 0x3af   : > { %v4094_v11 = vmax.f32 %v4002_v58, 0.0  ;;  %v3731_v41 = vpop.f32.mrb[118].mxu0  ;;  %v4005_v57 = vadd.f32 %v4916_v4, %v4764_v18  ;;  %v3996_v10 = vpop.f32.mrb[183].mxu1 }
 0x3b0   : > { %v4092_v59 = vmax.f32 %v3994_v37, 0.0  ;;  %v4924_v36 = vadd.f32 %v4923_v19, %v3731_v41  ;;  %v3733_v56 = vpop.f32.mrb[119].mxu0  ;;  %v3997_v43 = vadd.f32 %v6989_v39, %v3996_v10 }
 0x3b1   : > { %4158 = vst [vmem:[%s6830_s20 + $0x1b0] sm:$0xff] %v4094_v11  ;;  %v4095_v51 = vmax.f32 %v4005_v57, 0.0 }
 0x3b2   : > { %4156 = vst [vmem:[%s6830_s20 + $0x1a0] sm:$0xff] %v4092_v59  ;;  %v4093_v14 = vmax.f32 %v3997_v43, 0.0 }
 0x3b3   : > { %4159 = vst [vmem:[%s6830_s20 + $0x1b8] sm:$0xff] %v4095_v51 }
 0x3b4   : > { %4157 = vst [vmem:[%s6830_s20 + $0x1a8] sm:$0xff] %v4093_v14  ;;  %v4767_v15 = vpop.f32.mrb[184].mxu1 }
 0x3b5   : > { %v3736_v33 = vpop.f32.mrb[120].mxu0  ;;  %v4018_v44 = vadd.f32 %v4922_v1, %v4767_v15  ;;  %v4009_v24 = vpop.f32.mrb[185].mxu1 }
 0x3b6   : > { %v4926_v38 = vadd.f32 %v4925_v49, %v3736_v33  ;;  %v3738_v39 = vpop.f32.mrb[121].mxu0  ;;  %v4010_v9 = vadd.f32 %v4918_v47, %v4009_v24  ;;  %v4768_v61 = vpop.f32.mrb[186].mxu1  ;;  %v7149_v47 = vld [vmem:[#allocation28_spill] sm:$0xff] }
 0x3b7   : > { %v4098_v23 = vmax.f32 %v4018_v44, 0.0  ;;  %v3739_v28 = vpop.f32.mrb[122].mxu0  ;;  %v4021_v4 = vadd.f32 %v4924_v36, %v4768_v61  ;;  %v4012_v45 = vpop.f32.mrb[187].mxu1  ;;  %v4931_v46 = vadd.f32 %v7007_v50, %v7149_v47 }
 0x3b8   : > { %v4096_v17 = vmax.f32 %v4010_v9, 0.0  ;;  %v4928_v54 = vadd.f32 %v4927_v32, %v3739_v28  ;;  %v3741_v26 = vpop.f32.mrb[123].mxu0  ;;  %v4013_v63 = vadd.f32 %v4920_v8, %v4012_v45 }
 0x3b9   : > { %4162 = vst [vmem:[%s6830_s20 + $0x1d0] sm:$0xff] %v4098_v23  ;;  %v4099_v40 = vmax.f32 %v4021_v4, 0.0 }
 0x3ba   : > { %4160 = vst [vmem:[%s6830_s20 + $0x1c0] sm:$0xff] %v4096_v17  ;;  %v4097_v21 = vmax.f32 %v4013_v63, 0.0 }
 0x3bb   : > { %4163 = vst [vmem:[%s6830_s20 + $0x1d8] sm:$0xff] %v4099_v40 }
 0x3bc   : > { %4161 = vst [vmem:[%s6830_s20 + $0x1c8] sm:$0xff] %v4097_v21  ;;  %v4771_v6 = vpop.f32.mrb[188].mxu1 }
 0x3bd   : > { %v3744_v27 = vpop.f32.mrb[124].mxu0  ;;  %v4025_v22 = vpop.f32.mrb[189].mxu1 }
 0x3be   : > { %v4930_v29 = vadd.f32 %v4929_v12, %v3744_v27  ;;  %v3746_v5 = vpop.f32.mrb[125].mxu0  ;;  %v4026_v25 = vadd.f32 %v4926_v38, %v4025_v22  ;;  %v4772_v62 = vpop.f32.mrb[190].mxu1 }
 0x3bf   : > { %v3747_v3 = vpop.f32.mrb[126].mxu0  ;;  %v4028_v48 = vpop.f32.mrb[191].mxu1 }
 0x3c0   : > { %v4034_v2 = vadd.f32 %v4930_v29, %v4771_v6  ;;  %v4100_v8 = vmax.f32 %v4026_v25, 0.0  ;;  %v4932_v30 = vadd.f32 %v4931_v46, %v3747_v3  ;;  %v3749_v53 = vpop.f32.mrb[127].mxu0  ;;  %v4029_v16 = vadd.f32 %v4928_v54, %v4028_v48 }
 0x3c2   : > { %v4102_v7 = vmax.f32 %v4034_v2, 0.0  ;;  %4164 = vst [vmem:[%s6830_s20 + $0x1e0] sm:$0xff] %v4100_v8  ;;  %v4037_v50 = vadd.f32 %v4932_v30, %v4772_v62  ;;  %v4101_v31 = vmax.f32 %v4029_v16, 0.0 }
 0x3c4   : > { %4166 = vst [vmem:[%s6830_s20 + $0x1f0] sm:$0xff] %v4102_v7  ;;  %v4103_v20 = vmax.f32 %v4037_v50, 0.0  ;;  %4165 = vst [vmem:[%s6830_s20 + $0x1e8] sm:$0xff] %v4101_v31 }
 0x3c6   : > { %4167 = vst [vmem:[%s6830_s20 + $0x1f8] sm:$0xff] %v4103_v20 }
 0x3c7   : > { %5854 = shalt.err (!%p5851_p7)
}
 0x3c8   : > { %s5855_s17 = scalar_lea.hbm %s7050_s23, 8192  ;;  %s5859_s29 = scalar_lea.hbm %s7101_s3, 32768 }
 0x3c9   : > { %p5856_p9 = scmp.ne.s32.totalorder %s7050_s23, %s5855_s17  ;;  %p5860_p5 = scmp.lt.u32.totalorder %s7050_s23, %s7101_s3 }
 0x3ca   : > { %p5861_p10 = scmp.lt.u32.totalorder %s5859_s29, %s5855_s17  ;;  %p5863_p1 = scmp.lt.u32.totalorder %s5855_s17, %s7050_s23 }
 0x3cb   : > { %p5857_p12 = pnand %p5856_p9, %p6057_p4 }
 0x3cc   : > { %p5862_p11 = por %p5861_p10, %p5860_p5 }
 0x3cd   : > { %p5858_p0 = pneg %p5857_p12 }
 0x3ce   : > { %p5864_p2 = por %p5863_p1, %p5862_p11 }
 0x3d0   : > { %p5865_p6 = pnand %p5864_p2, %p5858_p0 }
 0x3d2   : > { %5868 = shalt.err (!%p5865_p6)
}
 0x3d3   : > { %s5922_s18 = smov 128   ;;  %s5923_s20 = smov 8  }
 0x3d4   : > { %5202 = dma.vmem_to_hbm [thread:$0]  (%p6057_p4), %s7052_s24, 8192, %s7050_s23, %s4169_s16, %s5922_s18, %s5922_s18, %s5923_s20  }
 0x3d5 PF: > { %p5224_p8 = scmp.ge.s32.totalorder %s5911_s15, 2  ;;  %s4197_s11 = sand.u32 1, %s5899_s12  }
 0x3d6   : > { %p7150_p13 = scmp.ne.s32.totalorder %s7106_s19, 0  ;;  %s4198_s27 = scalar_lea.sflag [#allocation4], %s4197_s11 }
 0x3d8   : > { %p5216_p3 = pnand %p5224_p8, %p7150_p13 }
 0x3da   : > { %5894 = dma.done.wait (!%p5216_p3), %s4198_s27, 8192  }
 0x3db   : > { %5896 = vsyncadd (!%p5216_p3), %s4198_s27, 4294959104  ;;  %p17_p7 = scmp.ge.s32.totalorder %s6047_s5, 6   ;;  %s7151_s12 = smov %s5903_s13 }
 0x3dc   : > { %s7152_s13 = smov %s5907_s14  ;;  %s7153_s14 = smov %s6063_s8 }
 0x3dd   : > { %s7154_s15 = smov %s6047_s5  ;;  %19 = sbr.rel (!%p17_p7) target bundleno = 6 (0x6), region = 85 }
 0x3e4   :  { %4203 = vsyncpa [#allocation3], 1 }
 0x3e5   :  { %4205 = vsyncpa [#allocation3 + $0x1], 1 }
 0x3e6   :  { %4206 = vsyncpa [#allocation6], 1 }
 0x3e7   :  { %4207 = vsyncpa [#allocation4], 1 }
 0x3e8   :  { %4209 = vsyncpa [#allocation4 + $0x1], 1 }

</bundles_post_ra>
